<compile_context>
chip_gen: v7x
topology: tpu7x:2x2x1
jax: 0.10.0
libtpu: 0.0.40
codegen_flags: <defaults>
</compile_context>

<pallas_src>
import functools

import jax
import jax.numpy as jnp
from jax import lax
from jax.experimental import pallas as pl
from jax.experimental.pallas import tpu as pltpu


def _round_up(x, m):
    return ((x + m - 1) // m) * m


def value_mlp_kernel(x_ref, w1_ref, b1_ref, w2_ref, b2_ref,
                     w3_ref, b3_ref, w4_ref, b4_ref, o_ref, *, mxu_dtype):
    """4-layer MLP on one packed batch tile.

    x_ref:  (bt/8, 8*obs_dim)  packed obs rows (row r holds batch rows 8r..8r+7)
    w*_ref: block-diagonal kron(I8, W) weights (already in MXU dtype)
    o_ref:  (8, bt/8)          o[j, r] = value(batch row 8r + j)
    """

    def act(a):
        # Only the activation operand is cast in-kernel (weights pre-cast on host).
        return a if mxu_dtype is None else a.astype(mxu_dtype)

    xp = x_ref[...]                                        # (bt/8, 8*obs_dim)

    # Layer 1: (8H, 8*obs_dim) x (bt/8, 8*obs_dim)^T -> (8H, bt/8).
    # Both operands are lane-dense; contraction over the minor dim of each
    # (standard q @ k^T MXU pattern), f32 accumulation.
    h = lax.dot_general(w1_ref[...], act(xp), (((1,), (1,)), ((), ())),
                        preferred_element_type=jnp.float32)
    h = jnp.maximum(h + b1_ref[...], 0.0)                  # bias/ReLU in f32 (VPU)

    # Layers 2, 3: full-width (8H, 8H) @ (8H, bt/8) MXU matmuls.
    h = jnp.dot(w2_ref[...], act(h), preferred_element_type=jnp.float32)
    h = jnp.maximum(h + b2_ref[...], 0.0)
    h = jnp.dot(w3_ref[...], act(h), preferred_element_type=jnp.float32)
    h = jnp.maximum(h + b3_ref[...], 0.0)

    # Value head: (8, 8H) @ (8H, bt/8) -> (8, bt/8), lane-dense over the batch.
    v = jnp.dot(w4_ref[...], act(h), preferred_element_type=jnp.float32)
    o_ref[...] = (v + b4_ref[0, 0]).astype(o_ref.dtype)


def value_network_forward(obs, params, *, batch_tile=8192, mxu_dtype=None,
                          vmem_limit_bytes=None):
    """obs: (B, obs_dim) f32.  params: PyTorch-shaped (out, in) weights, (out,) biases.

    batch_tile (in un-packed batch rows) is sweepable; it is rounded to a
    multiple of 1024 so the packed obs block stays sublane-aligned and the
    (8, bt/8) output block stays lane-aligned, and it is capped so that large
    batches produce >= 2 grid steps (both v7x TensorCores busy).
    mxu_dtype=jnp.bfloat16 enables the bf16 MXU path on v5e/v6e/v7x.
    """
    B, obs_dim = obs.shape
    H = params["w1"].shape[0]

    # Pack 8 batch rows per lane-row: (B, obs_dim) -> (B/8, 8*obs_dim).
    # Metadata-only (bitcast) reshape when B % 8 == 0; otherwise a small pad
    # to the next multiple of 8 is unavoidable for the packed view.
    B8 = _round_up(B, 8)
    obs_p = obs if B8 == B else jnp.pad(obs, ((0, B8 - B), (0, 0)))
    obs_p = obs_p.reshape(B8 // 8, 8 * obs_dim)

    # Tile choice: >= 1024 rows, multiple of 1024 for alignment; keep >= 2 grid
    # steps when the batch allows it (v7x megacore sharding of "parallel").
    batch_tile = max(1024, _round_up(min(batch_tile, B8), 1024))
    if B8 >= 2048:
        batch_tile = min(batch_tile, _round_up(pl.cdiv(B8, 2), 1024))
    grid = (pl.cdiv(B8, batch_tile),)
    bt8 = batch_tile // 8

    # Host-side parameter prep (tiny, one-time under jit):
    # block-diagonal weights so the kernel consumes the packed layout directly;
    # pre-cast weights to the MXU dtype, keep biases f32 for the VPU.
    wdt = jnp.float32 if mxu_dtype is None else mxu_dtype
    eye8 = jnp.eye(8, dtype=jnp.float32)
    w1 = jnp.kron(eye8, params["w1"]).astype(wdt)          # (8H, 8*obs_dim)
    w2 = jnp.kron(eye8, params["w2"]).astype(wdt)          # (8H, 8H)
    w3 = jnp.kron(eye8, params["w3"]).astype(wdt)          # (8H, 8H)
    w4 = jnp.kron(eye8, params["w4"]).astype(wdt)          # (8, 8H)
    b1 = jnp.tile(params["b1"], 8).reshape(8 * H, 1)
    b2 = jnp.tile(params["b2"], 8).reshape(8 * H, 1)
    b3 = jnp.tile(params["b3"], 8).reshape(8 * H, 1)
    b4 = params["b4"].reshape(1, 1)                        # scalar -> SMEM

    def rep(shape):
        # Whole-array parameter block, same block index every step
        # (Pallas only copies it once).
        return pl.BlockSpec(shape, lambda i: (0, 0))

    kernel = functools.partial(value_mlp_kernel, mxu_dtype=mxu_dtype)

    out = pl.pallas_call(
        kernel,
        out_shape=jax.ShapeDtypeStruct((8, B8 // 8), jnp.float32),
        grid_spec=pltpu.PrefetchScalarGridSpec(
            num_scalar_prefetch=0,
            grid=grid,
            in_specs=[
                pl.BlockSpec((bt8, 8 * obs_dim), lambda i: (i, 0)),  # packed obs
                rep((8 * H, 8 * obs_dim)), rep((8 * H, 1)),          # layer 1
                rep((8 * H, 8 * H)),       rep((8 * H, 1)),          # layer 2
                rep((8 * H, 8 * H)),       rep((8 * H, 1)),          # layer 3
                rep((8, 8 * H)),                                     # head weights
                pl.BlockSpec(memory_space=pltpu.MemorySpace.SMEM),   # b4 scalar
            ],
            out_specs=pl.BlockSpec((8, bt8), lambda i: (0, i)),
        ),
        compiler_params=pltpu.CompilerParams(
            dimension_semantics=("parallel",),
            vmem_limit_bytes=vmem_limit_bytes),
    )(obs_p, w1, b1, w2, b2, w3, b3, w4, b4)

    # Packed (8, B8/8) slab -> (B, 1):  out[j, r] is the value of batch row 8r+j.
    return out.T.reshape(-1, 1)[:B]


def init_params(key, obs_dim, hidden):
    """Deterministic synthetic parameters in PyTorch Linear layout."""
    ks = jax.random.split(key, 8)

    def lin(kw, kb, fan_in, fan_out):
        bound = 1.0 / jnp.sqrt(fan_in)
        w = jax.random.uniform(kw, (fan_out, fan_in), jnp.float32, -bound, bound)
        b = jax.random.uniform(kb, (fan_out,), jnp.float32, -bound, bound)
        return w, b

    w1, b1 = lin(ks[0], ks[1], obs_dim, hidden)
    w2, b2 = lin(ks[2], ks[3], hidden, hidden)
    w3, b3 = lin(ks[4], ks[5], hidden, hidden)
    w4, b4 = lin(ks[6], ks[7], hidden, 1)
    return dict(w1=w1, b1=b1, w2=w2, b2=b2, w3=w3, b3=b3, w4=w4, b4=b4)


def reference_forward(obs, p):
    h = jnp.maximum(obs @ p["w1"].T + p["b1"], 0.0)
    h = jnp.maximum(h @ p["w2"].T + p["b2"], 0.0)
    h = jnp.maximum(h @ p["w3"].T + p["b3"], 0.0)
    return h @ p["w4"].T + p["b4"]


if __name__ == "__main__":
    key = jax.random.PRNGKey(0)
    k_obs, k_obs2, k_obs3, k_param = jax.random.split(key, 4)

    batch = 8
    obs_dim = 16          # args.obs_dim
    num_hidden = 32       # args.policy_num_hidden

    params = init_params(k_param, obs_dim, num_hidden)

    # Small batch (single partial tile).
    obs = jax.random.normal(k_obs, (batch, obs_dim), dtype=jnp.float32)
    value = jax.block_until_ready(value_network_forward(obs, params))
    ref = reference_forward(obs, params)
    assert value.shape == (batch, 1)
    assert jnp.allclose(value, ref, atol=1e-4, rtol=1e-4)

    # Ragged batch (B % 8 != 0 -> mod-8 pad path).
    obs2 = jax.random.normal(k_obs2, (300, obs_dim), dtype=jnp.float32)
    value2 = jax.block_until_ready(value_network_forward(obs2, params))
    ref2 = reference_forward(obs2, params)
    assert value2.shape == (300, 1)
    assert jnp.allclose(value2, ref2, atol=1e-4, rtol=1e-4)

    # Multi-step grid: B=2056 triggers the >=2-grid-step cap (two tiles, the
    # second partial) with no full-array padding.
    obs3 = jax.random.normal(k_obs3, (2056, obs_dim), dtype=jnp.float32)
    value3 = jax.block_until_ready(value_network_forward(obs3, params))
    ref3 = reference_forward(obs3, params)
    assert value3.shape == (2056, 1)
    assert jnp.allclose(value3, ref3, atol=1e-4, rtol=1e-4)

    # bf16 MXU inputs (fast path on v5e/v6e/v7x), f32 accumulation -> loose tol.
    value_bf16 = jax.block_until_ready(
        value_network_forward(obs, params, mxu_dtype=jnp.bfloat16))
    assert jnp.allclose(value_bf16, ref, atol=5e-2, rtol=5e-2)

    print("KERNEL_OK")
</pallas_src>

<mosaic_0001>
module attributes {stable_mosaic.version = 11 : i64} {
  func.func @value_mlp_kernel(%arg0: i32, %arg1: memref<128x128xf32, #tpu.memory_space<vmem>>, %arg2: memref<256x128xf32, #tpu.memory_space<vmem>>, %arg3: memref<256x1xf32, #tpu.memory_space<vmem>>, %arg4: memref<256x256xf32, #tpu.memory_space<vmem>>, %arg5: memref<256x1xf32, #tpu.memory_space<vmem>>, %arg6: memref<256x256xf32, #tpu.memory_space<vmem>>, %arg7: memref<256x1xf32, #tpu.memory_space<vmem>>, %arg8: memref<8x256xf32, #tpu.memory_space<vmem>>, %arg9: memref<1x1xf32, #tpu.memory_space<smem>>, %arg10: memref<8x128xf32, #tpu.memory_space<vmem>>) attributes {dimension_semantics = [#tpu.dimension_semantics<parallel>], iteration_bounds = array<i64: 1>, scalar_prefetch = 0 : i64, scratch_operands = 0 : i64, tpu.core_type = #tpu.core_type<tc>, window_params = [{transform_indices = @transform_0, window_bounds = array<i64: 128, 128>}, {pipeline_mode = #tpu.pipeline_mode<synchronous>, transform_indices = @transform_1, window_bounds = array<i64: 256, 128>}, {pipeline_mode = #tpu.pipeline_mode<synchronous>, transform_indices = @transform_2, window_bounds = array<i64: 256, 1>}, {pipeline_mode = #tpu.pipeline_mode<synchronous>, transform_indices = @transform_3, window_bounds = array<i64: 256, 256>}, {pipeline_mode = #tpu.pipeline_mode<synchronous>, transform_indices = @transform_4, window_bounds = array<i64: 256, 1>}, {pipeline_mode = #tpu.pipeline_mode<synchronous>, transform_indices = @transform_5, window_bounds = array<i64: 256, 256>}, {pipeline_mode = #tpu.pipeline_mode<synchronous>, transform_indices = @transform_6, window_bounds = array<i64: 256, 1>}, {pipeline_mode = #tpu.pipeline_mode<synchronous>, transform_indices = @transform_7, window_bounds = array<i64: 8, 256>}, {transform_indices = @transform_8, window_bounds = array<i64: 1, 1>}, {transform_indices = @transform_9, window_bounds = array<i64: 8, 128>}]} {
    %c0 = arith.constant 0 : index
    %c0_0 = arith.constant 0 : index
    %0 = vector.load %arg1[%c0, %c0_0] : memref<128x128xf32, #tpu.memory_space<vmem>>, vector<128x128xf32>
    %c0_1 = arith.constant 0 : index
    %c0_2 = arith.constant 0 : index
    %1 = vector.load %arg2[%c0_1, %c0_2] : memref<256x128xf32, #tpu.memory_space<vmem>>, vector<256x128xf32>
    %cst = arith.constant dense<0.000000e+00> : vector<256x128xf32>
    %2 = tpu.matmul %1, %0, %cst {dimension_numbers = #tpu.dot_dimension_numbers<[1], [1], [0], [0], [0, 0, 1, 0], [], []>} : vector<256x128xf32>, vector<128x128xf32>, vector<256x128xf32> -> vector<256x128xf32>
    %c0_3 = arith.constant 0 : index
    %c0_4 = arith.constant 0 : index
    %3 = vector.load %arg3[%c0_3, %c0_4] : memref<256x1xf32, #tpu.memory_space<vmem>>, vector<256x1xf32>
    %4 = vector.broadcast %3 : vector<256x1xf32> to vector<256x128xf32>
    %5 = arith.addf %2, %4 : vector<256x128xf32>
    %cst_5 = arith.constant 0.000000e+00 : f32
    %6 = vector.broadcast %cst_5 : f32 to vector<256x128xf32>
    %7 = arith.maximumf %5, %6 : vector<256x128xf32>
    %c0_6 = arith.constant 0 : index
    %c0_7 = arith.constant 0 : index
    %8 = vector.load %arg4[%c0_6, %c0_7] : memref<256x256xf32, #tpu.memory_space<vmem>>, vector<256x256xf32>
    %cst_8 = arith.constant dense<0.000000e+00> : vector<256x128xf32>
    %9 = tpu.matmul %8, %7, %cst_8 {dimension_numbers = #tpu.dot_dimension_numbers<[1], [0], [0], [1], [0, 0, 1, 1], [], []>} : vector<256x256xf32>, vector<256x128xf32>, vector<256x128xf32> -> vector<256x128xf32>
    %c0_9 = arith.constant 0 : index
    %c0_10 = arith.constant 0 : index
    %10 = vector.load %arg5[%c0_9, %c0_10] : memref<256x1xf32, #tpu.memory_space<vmem>>, vector<256x1xf32>
    %11 = vector.broadcast %10 : vector<256x1xf32> to vector<256x128xf32>
    %12 = arith.addf %9, %11 : vector<256x128xf32>
    %cst_11 = arith.constant 0.000000e+00 : f32
    %13 = vector.broadcast %cst_11 : f32 to vector<256x128xf32>
    %14 = arith.maximumf %12, %13 : vector<256x128xf32>
    %c0_12 = arith.constant 0 : index
    %c0_13 = arith.constant 0 : index
    %15 = vector.load %arg6[%c0_12, %c0_13] : memref<256x256xf32, #tpu.memory_space<vmem>>, vector<256x256xf32>
    %cst_14 = arith.constant dense<0.000000e+00> : vector<256x128xf32>
    %16 = tpu.matmul %15, %14, %cst_14 {dimension_numbers = #tpu.dot_dimension_numbers<[1], [0], [0], [1], [0, 0, 1, 1], [], []>} : vector<256x256xf32>, vector<256x128xf32>, vector<256x128xf32> -> vector<256x128xf32>
    %c0_15 = arith.constant 0 : index
    %c0_16 = arith.constant 0 : index
    %17 = vector.load %arg7[%c0_15, %c0_16] : memref<256x1xf32, #tpu.memory_space<vmem>>, vector<256x1xf32>
    %18 = vector.broadcast %17 : vector<256x1xf32> to vector<256x128xf32>
    %19 = arith.addf %16, %18 : vector<256x128xf32>
    %cst_17 = arith.constant 0.000000e+00 : f32
    %20 = vector.broadcast %cst_17 : f32 to vector<256x128xf32>
    %21 = arith.maximumf %19, %20 : vector<256x128xf32>
    %c0_18 = arith.constant 0 : index
    %c0_19 = arith.constant 0 : index
    %22 = vector.load %arg8[%c0_18, %c0_19] : memref<8x256xf32, #tpu.memory_space<vmem>>, vector<8x256xf32>
    %cst_20 = arith.constant dense<0.000000e+00> : vector<8x128xf32>
    %23 = tpu.matmul %22, %21, %cst_20 {dimension_numbers = #tpu.dot_dimension_numbers<[1], [0], [0], [1], [0, 0, 1, 1], [], []>} : vector<8x256xf32>, vector<256x128xf32>, vector<8x128xf32> -> vector<8x128xf32>
    %c0_21 = arith.constant 0 : index
    %c0_22 = arith.constant 0 : index
    %24 = memref.load %arg9[%c0_21, %c0_22] : memref<1x1xf32, #tpu.memory_space<smem>>
    %25 = vector.broadcast %24 : f32 to vector<8x128xf32>
    %26 = arith.addf %23, %25 : vector<8x128xf32>
    %c0_23 = arith.constant 0 : index
    %c0_24 = arith.constant 0 : index
    %27 = vector.load %arg10[%c0_23, %c0_24] : memref<8x128xf32, #tpu.memory_space<vmem>>, vector<8x128xf32>
    tpu.vector_store %arg10[%c0_23, %c0_24], %26 {strides = array<i32>} : memref<8x128xf32, #tpu.memory_space<vmem>>, vector<8x128xf32>,
    return
  }
  func.func @transform_0(%arg0: i32) -> (i32, i32) {
    %c0_i32 = arith.constant 0 : i32
    %c0_i32_0 = arith.constant 0 : i32
    return %arg0, %c0_i32 : i32, i32
  }
  func.func @transform_1(%arg0: i32) -> (i32, i32) {
    %c0_i32 = arith.constant 0 : i32
    %c0_i32_0 = arith.constant 0 : i32
    %c0_i32_1 = arith.constant 0 : i32
    return %c0_i32, %c0_i32_0 : i32, i32
  }
  func.func @transform_2(%arg0: i32) -> (i32, i32) {
    %c0_i32 = arith.constant 0 : i32
    %c0_i32_0 = arith.constant 0 : i32
    %c0_i32_1 = arith.constant 0 : i32
    return %c0_i32, %c0_i32_0 : i32, i32
  }
  func.func @transform_3(%arg0: i32) -> (i32, i32) {
    %c0_i32 = arith.constant 0 : i32
    %c0_i32_0 = arith.constant 0 : i32
    %c0_i32_1 = arith.constant 0 : i32
    return %c0_i32, %c0_i32_0 : i32, i32
  }
  func.func @transform_4(%arg0: i32) -> (i32, i32) {
    %c0_i32 = arith.constant 0 : i32
    %c0_i32_0 = arith.constant 0 : i32
    %c0_i32_1 = arith.constant 0 : i32
    return %c0_i32, %c0_i32_0 : i32, i32
  }
  func.func @transform_5(%arg0: i32) -> (i32, i32) {
    %c0_i32 = arith.constant 0 : i32
    %c0_i32_0 = arith.constant 0 : i32
    %c0_i32_1 = arith.constant 0 : i32
    return %c0_i32, %c0_i32_0 : i32, i32
  }
  func.func @transform_6(%arg0: i32) -> (i32, i32) {
    %c0_i32 = arith.constant 0 : i32
    %c0_i32_0 = arith.constant 0 : i32
    %c0_i32_1 = arith.constant 0 : i32
    return %c0_i32, %c0_i32_0 : i32, i32
  }
  func.func @transform_7(%arg0: i32) -> (i32, i32) {
    %c0_i32 = arith.constant 0 : i32
    %c0_i32_0 = arith.constant 0 : i32
    %c0_i32_1 = arith.constant 0 : i32
    return %c0_i32, %c0_i32_0 : i32, i32
  }
  func.func @transform_8(%arg0: i32) -> (i32, i32) {
    %c0_i32 = arith.constant 0 : i32
    %c0_i32_0 = arith.constant 0 : i32
    %c0_i32_1 = arith.constant 0 : i32
    return %c0_i32, %c0_i32_0 : i32, i32
  }
  func.func @transform_9(%arg0: i32) -> (i32, i32) {
    %c0_i32 = arith.constant 0 : i32
    %c0_i32_0 = arith.constant 0 : i32
    return %c0_i32, %arg0 : i32, i32
  }
}

</mosaic_0001>

<bundles_post_ra>
// kernel: tpu_custom_call.1
= control target key start
LH: loop header
LB: loop body
LE: loop exit
PB: predicated region body
PF: predicated region fallthrough
CT: control target
= control target key end

     0   :  { %15 = vsyncpa [#allocation4], 0  ;;  %s2004_s30 = smov [#allocation3]   ;;  %s2811_s0 = inlined_call_operand.vmem [shape: f32[1,128], index: 0, kind: input, shape index: {}]   ;;  %s2812_s1 = inlined_call_operand.vmem [shape: f32[256,128], index: 1, kind: input, shape index: {}]   ;;  %s2813_s2 = inlined_call_operand.vmem [shape: f32[256,1], index: 2, kind: input, shape index: {}]   ;;  %s2814_s3 = inlined_call_operand.vmem [shape: f32[256,256], index: 3, kind: input, shape index: {}]   ;;  %s2815_s4 = inlined_call_operand.vmem [shape: f32[256,1], index: 4, kind: input, shape index: {}]   ;;  %s2816_s5 = inlined_call_operand.hbm [shape: f32[256,256], index: 5, kind: input, shape index: {}]   ;;  %s2817_s6 = inlined_call_operand.vmem [shape: f32[256,1], index: 6, kind: input, shape index: {}]   ;;  %s2818_s7 = inlined_call_operand.vmem [shape: f32[8,256], index: 7, kind: input, shape index: {}]   ;;  %s2819_s8 = inlined_call_operand.<no memory space> [shape: f32[1,1], index: 8, kind: input, shape index: {}]   ;;  %s2820_s9 = inlined_call_operand.vmem [shape: f32[8,1], index: 9, kind: output, shape index: {}]  }
   0x1   :  { %s31_s10 = sshll.u32 %s2004_s30, 4  ;;  %s1980_s13 = scalar_lea.hbm %s2816_s5, 8192  ;;  %s32_s10 = int_to_ptr.vmem [resolvable:$true] %s31_s10 }
   0x2   :  { %p1981_p0 = scmp.ne.s32.totalorder %s2816_s5, %s1980_s13  ;;  %p1984_p1 = scmp.lt.u32.totalorder %s1980_s13, %s2816_s5 }
   0x4   :  { %p1986_p2 = pnand %p1984_p1, %p1981_p0 }
   0x6   :  { %1989 = shalt.err (!%p1986_p2)
}
   0x7   :  { %s1990_s18 = scalar_lea.vmem %s32_s10, 8192  ;;  %p1995_p4 = scmp.lt.s32.totalorder %s32_s10, %s32_s10 }
   0x8   :  { %p1991_p3 = scmp.ne.s32.totalorder %s32_s10, %s1990_s18  ;;  %p1996_p5 = scmp.lt.s32.totalorder %s1990_s18, %s1990_s18 }
   0xa   :  { %p1997_p6 = por %p1996_p5, %p1995_p4 }
   0xc   :  { %p1998_p7 = pnand %p1997_p6, %p1991_p3 }
   0xe   :  { %2001 = shalt.err (!%p1998_p7)
}
   0xf   :  { %s2005_s19 = smov 256   ;;  %s2006_s20 = smov 16  }
  0x10   :  { %37 = dma.hbm_to_vmem [thread:$0]  %s2816_s5, 8192, %s32_s10, [#allocation4], %s2005_s19, %s2005_s19, %s2006_s20  }
  0x11   :  { %2002 = dma.done.wait [#allocation4], 8192  }
  0x12   :  { %2003 = vsyncadd [#allocation4], 4294959104  ;;  %v2007_v0 = vmov 0   ;;  %v97_v1 = vld [vmem:[%s2813_s2 + $0x10] sm:$0xff]  ;;  %v95_v2 = vld [vmem:[%s2813_s2] sm:$0xff] }
  0x13   :  { %1979 = vset.pattern.permute.xlu1 %v2007_v0  ;;  %1978 = vset.pattern.permute.xlu0 %v2007_v0  ;;  %v47_v3 = vld [vmem:[%s2811_s0] sm:$0xff]  ;;  %v48_v4 = vld [vmem:[%s2811_s0 + $0x8] sm:$0xff]  ;;  %v98_v6 = vld [vmem:[%s2813_s2 + $0x18] sm:$0xff] }
  0x14   :  { %139 = vperm.xlu1 %1979, %v97_v1   ;;  %129 = vperm.xlu0 %1978, %v95_v2   ;;  %v1813_v5 = vpack.c.bf16 %v48_v4, %v47_v3  ;;  %v49_v7 = vld [vmem:[%s2811_s0 + $0x10] sm:$0xff]  ;;  %v96_v8 = vld [vmem:[%s2813_s2 + $0x8] sm:$0xff]  ;;  %v50_v9 = vld [vmem:[%s2811_s0 + $0x18] sm:$0xff] }
  0x15   :  { %v1817_v10 = vpack.c.bf16 %v50_v9, %v49_v7  ;;  %v100_v11 = vld [vmem:[%s2813_s2 + $0x28] sm:$0xff]  ;;  %v99_v12 = vld [vmem:[%s2813_s2 + $0x20] sm:$0xff]  ;;  %v102_v15 = vld [vmem:[%s2813_s2 + $0x38] sm:$0xff] }
  0x16   :  { %1814 = vmatprep.subr.bf16.mxu0 %v1813_v5  ;;  %v51_v13 = vld [vmem:[%s2811_s0 + $0x20] sm:$0xff]  ;;  %v52_v14 = vld [vmem:[%s2811_s0 + $0x28] sm:$0xff]  ;;  %v101_v17 = vld [vmem:[%s2813_s2 + $0x30] sm:$0xff] }
  0x17   :  { %1816 = vmatpush3.bf16.xpose.msra.mxu0 %v1813_v5  ;;  %v1821_v16 = vpack.c.bf16 %v52_v14, %v51_v13  ;;  %v104_v18 = vld [vmem:[%s2813_s2 + $0x48] sm:$0xff]  ;;  %v103_v19 = vld [vmem:[%s2813_s2 + $0x40] sm:$0xff]  ;;  %v53_v20 = vld [vmem:[%s2811_s0 + $0x30] sm:$0xff] }
  0x18   :  { %144 = vperm.xlu1 %1979, %v98_v6   ;;  %134 = vperm.xlu0 %1978, %v96_v8   ;;  %v54_v21 = vld [vmem:[%s2811_s0 + $0x38] sm:$0xff]  ;;  %v63_v22 = vld [vmem:[%s2812_s1] sm:$0xff]  ;;  %v105_v25 = vld [vmem:[%s2813_s2 + $0x50] sm:$0xff] }
  0x19   :  { %1818 = vmatprep.subr.bf16.mxu0 %v1817_v10  ;;  %1765 = vmatprep.mubr.f32.mxu0 %v63_v22  ;;  %v106_v23 = vld [vmem:[%s2813_s2 + $0x58] sm:$0xff]  ;;  %v1825_v24 = vpack.c.bf16 %v54_v21, %v53_v20  ;;  %v108_v26 = vld [vmem:[%s2813_s2 + $0x68] sm:$0xff]  ;;  %v107_v27 = vld [vmem:[%s2813_s2 + $0x60] sm:$0xff] }
  0x1a   :  { %v55_v28 = vld [vmem:[%s2811_s0 + $0x40] sm:$0xff]  ;;  %v56_v29 = vld [vmem:[%s2811_s0 + $0x48] sm:$0xff]  ;;  %v110_v30 = vld [vmem:[%s2813_s2 + $0x78] sm:$0xff] }
  0x1b   :  { %v1829_v31 = vpack.c.bf16 %v56_v29, %v55_v28  ;;  %v109_v32 = vld [vmem:[%s2813_s2 + $0x70] sm:$0xff]  ;;  %v112_v33 = vld [vmem:[%s2813_s2 + $0x88] sm:$0xff]  ;;  %v111_v34 = vld [vmem:[%s2813_s2 + $0x80] sm:$0xff] }
  0x1c   :  { %154 = vperm.xlu1 %1979, %v100_v11   ;;  %149 = vperm.xlu0 %1978, %v99_v12   ;;  %v57_v35 = vld [vmem:[%s2811_s0 + $0x50] sm:$0xff]  ;;  %v58_v36 = vld [vmem:[%s2811_s0 + $0x58] sm:$0xff]  ;;  %v116_v40 = vld [vmem:[%s2813_s2 + $0xa8] sm:$0xff] }
  0x1d   :  { %v114_v37 = vld [vmem:[%s2813_s2 + $0x98] sm:$0xff]  ;;  %v1833_v38 = vpack.c.bf16 %v58_v36, %v57_v35  ;;  %v113_v39 = vld [vmem:[%s2813_s2 + $0x90] sm:$0xff]  ;;  %v115_v41 = vld [vmem:[%s2813_s2 + $0xa0] sm:$0xff] }
  0x1e   :  { %v59_v42 = vld [vmem:[%s2811_s0 + $0x60] sm:$0xff]  ;;  %v60_v43 = vld [vmem:[%s2811_s0 + $0x68] sm:$0xff]  ;;  %v118_v44 = vld [vmem:[%s2813_s2 + $0xb8] sm:$0xff] }
  0x1f   :  { %1820 = vmatpush3.bf16.xpose.msra.mxu0 %v1817_v10  ;;  %v1837_v45 = vpack.c.bf16 %v60_v43, %v59_v42  ;;  %v117_v46 = vld [vmem:[%s2813_s2 + $0xb0] sm:$0xff]  ;;  %v120_v47 = vld [vmem:[%s2813_s2 + $0xc8] sm:$0xff]  ;;  %v119_v48 = vld [vmem:[%s2813_s2 + $0xc0] sm:$0xff] }
  0x20   :  { %164 = vperm.xlu1 %1979, %v102_v15   ;;  %159 = vperm.xlu0 %1978, %v101_v17   ;;  %v61_v49 = vld [vmem:[%s2811_s0 + $0x70] sm:$0xff]  ;;  %v62_v50 = vld [vmem:[%s2811_s0 + $0x78] sm:$0xff]  ;;  %v124_v54 = vld [vmem:[%s2813_s2 + $0xe8] sm:$0xff] }
  0x21   :  { %1822 = vmatprep.subr.bf16.mxu0 %v1821_v16  ;;  %v122_v51 = vld [vmem:[%s2813_s2 + $0xd8] sm:$0xff]  ;;  %v1841_v52 = vpack.c.bf16 %v62_v50, %v61_v49  ;;  %v121_v53 = vld [vmem:[%s2813_s2 + $0xd0] sm:$0xff]  ;;  %v123_v55 = vld [vmem:[%s2813_s2 + $0xe0] sm:$0xff] }
  0x22   :  { %v126_v56 = vld [vmem:[%s2813_s2 + $0xf8] sm:$0xff]  ;;  %v125_v57 = vld [vmem:[%s2813_s2 + $0xf0] sm:$0xff]  ;;  %v609_v58 = vld [vmem:[%s2815_s4 + $0x8] sm:$0xff] }
  0x23   :  { %v608_v59 = vld [vmem:[%s2815_s4] sm:$0xff]  ;;  %v64_v60 = vld [vmem:[%s2812_s1 + $0x8] sm:$0xff]  ;;  %v611_v61 = vld [vmem:[%s2815_s4 + $0x18] sm:$0xff] }
  0x24   :  { %174 = vperm.xlu1 %1979, %v104_v18   ;;  %169 = vperm.xlu0 %1978, %v103_v19   ;;  %v65_v62 = vld [vmem:[%s2812_s1 + $0x10] sm:$0xff]  ;;  %v66_v0 = vld [vmem:[%s2812_s1 + $0x18] sm:$0xff]  ;;  %v613_v1 = vld [vmem:[%s2815_s4 + $0x28] sm:$0xff] }
  0x25   :  { %v610_v63 = vld [vmem:[%s2815_s4 + $0x10] sm:$0xff]  ;;  %v67_v2 = vld [vmem:[%s2812_s1 + $0x20] sm:$0xff]  ;;  %v68_v4 = vld [vmem:[%s2812_s1 + $0x28] sm:$0xff] }
  0x26   :  { %v612_v3 = vld [vmem:[%s2815_s4 + $0x20] sm:$0xff]  ;;  %v615_v5 = vld [vmem:[%s2815_s4 + $0x38] sm:$0xff]  ;;  %v69_v6 = vld [vmem:[%s2812_s1 + $0x30] sm:$0xff] }
  0x27   :  { %1824 = vmatpush3.bf16.xpose.msra.mxu0 %v1821_v16  ;;  %v614_v7 = vld [vmem:[%s2815_s4 + $0x30] sm:$0xff]  ;;  %v70_v8 = vld [vmem:[%s2812_s1 + $0x38] sm:$0xff]  ;;  %v617_v9 = vld [vmem:[%s2815_s4 + $0x48] sm:$0xff] }
  0x28   :  { %184 = vperm.xlu1 %1979, %v106_v23   ;;  %179 = vperm.xlu0 %1978, %v105_v25   ;;  %v71_v10 = vld [vmem:[%s2812_s1 + $0x40] sm:$0xff]  ;;  %v72_v12 = vld [vmem:[%s2812_s1 + $0x48] sm:$0xff]  ;;  %v619_v13 = vld [vmem:[%s2815_s4 + $0x58] sm:$0xff] }
  0x29   :  { %1826 = vmatprep.subr.bf16.mxu0 %v1825_v24  ;;  %v616_v11 = vld [vmem:[%s2815_s4 + $0x40] sm:$0xff]  ;;  %v73_v14 = vld [vmem:[%s2812_s1 + $0x50] sm:$0xff]  ;;  %v74_v16 = vld [vmem:[%s2812_s1 + $0x58] sm:$0xff] }
  0x2a   :  { %v618_v15 = vld [vmem:[%s2815_s4 + $0x50] sm:$0xff]  ;;  %v621_v17 = vld [vmem:[%s2815_s4 + $0x68] sm:$0xff]  ;;  %v75_v18 = vld [vmem:[%s2812_s1 + $0x60] sm:$0xff] }
  0x2b   :  { %v620_v19 = vld [vmem:[%s2815_s4 + $0x60] sm:$0xff]  ;;  %v76_v20 = vld [vmem:[%s2812_s1 + $0x68] sm:$0xff]  ;;  %v623_v21 = vld [vmem:[%s2815_s4 + $0x78] sm:$0xff] }
  0x2c   :  { %194 = vperm.xlu1 %1979, %v108_v26   ;;  %189 = vperm.xlu0 %1978, %v107_v27   ;;  %v77_v22 = vld [vmem:[%s2812_s1 + $0x70] sm:$0xff]  ;;  %v625_v25 = vld [vmem:[%s2815_s4 + $0x88] sm:$0xff]  ;;  %v79_v26 = vld [vmem:[%s2812_s1 + $0x80] sm:$0xff] }
  0x2d   :  { %v622_v23 = vld [vmem:[%s2815_s4 + $0x70] sm:$0xff]  ;;  %v624_v27 = vld [vmem:[%s2815_s4 + $0x80] sm:$0xff]  ;;  %v80_v28 = vld [vmem:[%s2812_s1 + $0x88] sm:$0xff] }
  0x2e   :  { %v627_v29 = vld [vmem:[%s2815_s4 + $0x98] sm:$0xff]  ;;  %v628_v35 = vld [vmem:[%s2815_s4 + $0xa0] sm:$0xff]  ;;  %v84_v36 = vld [vmem:[%s2812_s1 + $0xa8] sm:$0xff] }
  0x2f   :  { %1828 = vmatpush3.bf16.xpose.msra.mxu0 %v1825_v24  ;;  %v78_v24 = vld [vmem:[%s2812_s1 + $0x78] sm:$0xff]  ;;  %v87_v42 = vld [vmem:[%s2812_s1 + $0xc0] sm:$0xff]  ;;  %v637_v49 = vld [vmem:[%s2815_s4 + $0xe8] sm:$0xff] }
  0x30   :  { %204 = vperm.xlu1 %1979, %v110_v30   ;;  %199 = vperm.xlu0 %1978, %v109_v32   ;;  %v81_v30 = vld [vmem:[%s2812_s1 + $0x90] sm:$0xff]  ;;  %v82_v32 = vld [vmem:[%s2812_s1 + $0x98] sm:$0xff]  ;;  %v632_v43 = vld [vmem:[%s2815_s4 + $0xc0] sm:$0xff] }
  0x31   :  { %1830 = vmatprep.subr.bf16.mxu0 %v1829_v31  ;;  %v91_v50 = vld [vmem:[%s2812_s1 + $0xe0] sm:$0xff] }
  0x34   :  { %214 = vperm.xlu1 %1979, %v112_v33   ;;  %209 = vperm.xlu0 %1978, %v111_v34   ;;  %v629_v33 = vld [vmem:[%s2815_s4 + $0xa8] sm:$0xff]  ;;  %v83_v34 = vld [vmem:[%s2812_s1 + $0xa0] sm:$0xff] }
  0x37   :  { %1832 = vmatpush3.bf16.xpose.msra.mxu0 %v1829_v31  ;;  %v626_v31 = vld [vmem:[%s2815_s4 + $0x90] sm:$0xff] }
  0x38   :  { %224 = vperm.xlu1 %1979, %v114_v37   ;;  %219 = vperm.xlu0 %1978, %v113_v39   ;;  %v631_v37 = vld [vmem:[%s2815_s4 + $0xb8] sm:$0xff]  ;;  %v630_v39 = vld [vmem:[%s2815_s4 + $0xb0] sm:$0xff] }
  0x39   :  { %1834 = vmatprep.subr.bf16.mxu0 %v1833_v38 }
  0x3c   :  { %234 = vperm.xlu1 %1979, %v116_v40   ;;  %229 = vperm.xlu0 %1978, %v115_v41   ;;  %v86_v40 = vld [vmem:[%s2812_s1 + $0xb8] sm:$0xff]  ;;  %v633_v41 = vld [vmem:[%s2815_s4 + $0xc8] sm:$0xff] }
  0x3f   :  { %1836 = vmatpush3.bf16.xpose.msra.mxu0 %v1833_v38  ;;  %v85_v38 = vld [vmem:[%s2812_s1 + $0xb0] sm:$0xff] }
  0x40   :  { %244 = vperm.xlu1 %1979, %v118_v44   ;;  %239 = vperm.xlu0 %1978, %v117_v46   ;;  %v88_v44 = vld [vmem:[%s2812_s1 + $0xc8] sm:$0xff]  ;;  %v89_v46 = vld [vmem:[%s2812_s1 + $0xd0] sm:$0xff] }
  0x41   :  { %1838 = vmatprep.subr.bf16.mxu0 %v1837_v45 }
  0x44   :  { %254 = vperm.xlu1 %1979, %v120_v47   ;;  %249 = vperm.xlu0 %1978, %v119_v48   ;;  %v634_v47 = vld [vmem:[%s2815_s4 + $0xd0] sm:$0xff]  ;;  %v90_v48 = vld [vmem:[%s2812_s1 + $0xd8] sm:$0xff] }
  0x47   :  { %1840 = vmatpush3.bf16.xpose.msra.mxu0 %v1837_v45  ;;  %v635_v45 = vld [vmem:[%s2815_s4 + $0xd8] sm:$0xff] }
  0x48   :  { %264 = vperm.xlu1 %1979, %v122_v51   ;;  %259 = vperm.xlu0 %1978, %v121_v53   ;;  %v636_v51 = vld [vmem:[%s2815_s4 + $0xe0] sm:$0xff]  ;;  %v639_v53 = vld [vmem:[%s2815_s4 + $0xf8] sm:$0xff] }
  0x49   :  { %1842 = vmatprep.subr.bf16.mxu0 %v1841_v52 }
  0x4c   :  { %274 = vperm.xlu1 %1979, %v124_v54   ;;  %269 = vperm.xlu0 %1978, %v123_v55   ;;  %v93_v54 = vld [vmem:[%s2812_s1 + $0xf0] sm:$0xff] }
  0x4d   :  { %v638_v55 = vld [vmem:[%s2815_s4 + $0xf0] sm:$0xff] }
  0x4f   :  { %1844 = vmatpush3.bf16.xpose.msra.mxu0 %v1841_v52  ;;  %v92_v52 = vld [vmem:[%s2812_s1 + $0xe8] sm:$0xff] }
  0x50   :  { %284 = vperm.xlu1 %1979, %v126_v56   ;;  %279 = vperm.xlu0 %1978, %v125_v57   ;;  %v94_v56 = vld [vmem:[%s2812_s1 + $0xf8] sm:$0xff]  ;;  %v1138_v57 = vld [vmem:[%s2817_s6 + $0x88] sm:$0xff] }
  0x54   :  { %647 = vperm.xlu1 %1979, %v609_v58   ;;  %642 = vperm.xlu0 %1978, %v608_v59   ;;  %v1137_v58 = vld [vmem:[%s2817_s6 + $0x80] sm:$0xff]  ;;  %v1122_v59 = vld [vmem:[%s2817_s6 + $0x8] sm:$0xff] }
  0x56   :  { %1766 = vmatmul.mubr.f32.vlgmr.msra.gmra.mrb[0].mxu0 %v64_v60  ;;  %v1121_v60 = vld [vmem:[%s2817_s6] sm:$0xff] }
  0x57   :  { %1768 = vmatprep.mubr.f32.mxu0 %v65_v62  ;;  %v1139_v62 = vld [vmem:[%s2817_s6 + $0x90] sm:$0xff] }
  0x58   :  { %657 = vperm.xlu1 %1979, %v611_v61   ;;  %652 = vperm.xlu0 %1978, %v610_v63   ;;  %v1140_v61 = vld [vmem:[%s2817_s6 + $0x98] sm:$0xff] }
  0x59   :  { %v1124_v63 = vld [vmem:[%s2817_s6 + $0x18] sm:$0xff] }
  0x5a   :  { %1769 = vmatmul.mubr.f32.gmra.mrb[2].mxu0 %v66_v0  ;;  %v1123_v0 = vld [vmem:[%s2817_s6 + $0x10] sm:$0xff] }
  0x5b   :  { %1771 = vmatprep.mubr.f32.mxu0 %v67_v2  ;;  %v1141_v2 = vld [vmem:[%s2817_s6 + $0xa0] sm:$0xff] }
  0x5c   :  { %667 = vperm.xlu1 %1979, %v613_v1   ;;  %662 = vperm.xlu0 %1978, %v612_v3   ;;  %v1142_v1 = vld [vmem:[%s2817_s6 + $0xa8] sm:$0xff] }
  0x5d   :  { %v1126_v3 = vld [vmem:[%s2817_s6 + $0x28] sm:$0xff] }
  0x5e   :  { %1772 = vmatmul.mubr.f32.gmra.mrb[4].mxu0 %v68_v4  ;;  %v1125_v4 = vld [vmem:[%s2817_s6 + $0x20] sm:$0xff] }
  0x5f   :  { %1774 = vmatprep.mubr.f32.mxu0 %v69_v6  ;;  %v1143_v6 = vld [vmem:[%s2817_s6 + $0xb0] sm:$0xff] }
  0x60   :  { %677 = vperm.xlu1 %1979, %v615_v5   ;;  %672 = vperm.xlu0 %1978, %v614_v7   ;;  %v1144_v5 = vld [vmem:[%s2817_s6 + $0xb8] sm:$0xff] }
  0x61   :  { %v1128_v7 = vld [vmem:[%s2817_s6 + $0x38] sm:$0xff] }
  0x62   :  { %1775 = vmatmul.mubr.f32.gmra.mrb[6].mxu0 %v70_v8  ;;  %v1127_v8 = vld [vmem:[%s2817_s6 + $0x30] sm:$0xff] }
  0x63   :  { %1777 = vmatprep.mubr.f32.mxu0 %v71_v10  ;;  %v2008_v10 = vmov 0.0|0.0  }
  0x64   :  { %687 = vperm.xlu1 %1979, %v617_v9   ;;  %682 = vperm.xlu0 %1978, %v616_v11   ;;  %v1146_v9 = vld [vmem:[%s2817_s6 + $0xc8] sm:$0xff]  ;;  %v1145_v11 = vld [vmem:[%s2817_s6 + $0xc0] sm:$0xff] }
  0x65   :  { %1845 = vmatprep.subr.bf16.mxu1 %v2008_v10  ;;  %1893 = vmatprep.subr.bf16.mxu0 %v2008_v10 }
  0x66   :  { %1778 = vmatmul.mubr.f32.gmra.mrb[8].mxu0 %v72_v12  ;;  %v1130_v12 = vld [vmem:[%s2817_s6 + $0x48] sm:$0xff] }
  0x67   :  { %1780 = vmatprep.mubr.f32.mxu0 %v73_v14  ;;  %v1148_v14 = vld [vmem:[%s2817_s6 + $0xd8] sm:$0xff] }
  0x68   :  { %697 = vperm.xlu1 %1979, %v619_v13   ;;  %692 = vperm.xlu0 %1978, %v618_v15   ;;  %v1129_v13 = vld [vmem:[%s2817_s6 + $0x40] sm:$0xff]  ;;  %v1147_v15 = vld [vmem:[%s2817_s6 + $0xd0] sm:$0xff] }
  0x6a   :  { %1781 = vmatmul.mubr.f32.gmra.mrb[10].mxu0 %v74_v16  ;;  %v1132_v16 = vld [vmem:[%s2817_s6 + $0x58] sm:$0xff] }
  0x6b   :  { %1783 = vmatprep.mubr.f32.mxu0 %v75_v18  ;;  %v1150_v18 = vld [vmem:[%s2817_s6 + $0xe8] sm:$0xff] }
  0x6c   :  { %707 = vperm.xlu1 %1979, %v621_v17   ;;  %702 = vperm.xlu0 %1978, %v620_v19   ;;  %v1131_v17 = vld [vmem:[%s2817_s6 + $0x50] sm:$0xff]  ;;  %v1149_v19 = vld [vmem:[%s2817_s6 + $0xe0] sm:$0xff] }
  0x6e   :  { %1784 = vmatmul.mubr.f32.gmra.mrb[12].mxu0 %v76_v20  ;;  %v1134_v20 = vld [vmem:[%s2817_s6 + $0x68] sm:$0xff] }
  0x6f   :  { %1786 = vmatprep.mubr.f32.mxu0 %v77_v22  ;;  %v1152_v22 = vld [vmem:[%s2817_s6 + $0xf8] sm:$0xff] }
  0x70   :  { %717 = vperm.xlu1 %1979, %v623_v21   ;;  %712 = vperm.xlu0 %1978, %v622_v23   ;;  %v1133_v21 = vld [vmem:[%s2817_s6 + $0x60] sm:$0xff]  ;;  %v1151_v23 = vld [vmem:[%s2817_s6 + $0xf0] sm:$0xff] }
  0x72   :  { %1787 = vmatmul.mubr.f32.gmra.mrb[14].mxu0 %v78_v24  ;;  %v1136_v24 = vld [vmem:[%s2817_s6 + $0x78] sm:$0xff] }
  0x73   :  { %1789 = vmatprep.mubr.f32.mxu0 %v79_v26  ;;  %v545_v26 = vld [vmem:[%s2814_s3 + $0x8] sm:$0xff] }
  0x74   :  { %727 = vperm.xlu1 %1979, %v625_v25   ;;  %722 = vperm.xlu0 %1978, %v624_v27   ;;  %v1135_v25 = vld [vmem:[%s2817_s6 + $0x70] sm:$0xff] }
  0x75   :  { %864 = vmatprep.mubr.f32.mxu1 %v545_v26 }
  0x76   :  { %1790 = vmatmul.mubr.f32.gmra.mrb[16].mxu0 %v80_v28 }
  0x77   :  { %1792 = vmatprep.mubr.f32.mxu0 %v81_v30 }
  0x78   :  { %737 = vperm.xlu1 %1979, %v627_v29   ;;  %732 = vperm.xlu0 %1978, %v626_v31  }
  0x7a   :  { %1793 = vmatmul.mubr.f32.gmra.mrb[18].mxu0 %v82_v32 }
  0x7b   :  { %1795 = vmatprep.mubr.f32.mxu0 %v83_v34 }
  0x7c   :  { %747 = vperm.xlu1 %1979, %v629_v33   ;;  %742 = vperm.xlu0 %1978, %v628_v35  }
  0x7e   :  { %1796 = vmatmul.mubr.f32.gmra.mrb[20].mxu0 %v84_v36 }
  0x7f   :  { %1798 = vmatprep.mubr.f32.mxu0 %v85_v38 }
  0x80   :  { %757 = vperm.xlu1 %1979, %v631_v37   ;;  %752 = vperm.xlu0 %1978, %v630_v39  }
  0x82   :  { %1799 = vmatmul.mubr.f32.gmra.mrb[22].mxu0 %v86_v40 }
  0x83   :  { %1801 = vmatprep.mubr.f32.mxu0 %v87_v42 }
  0x84   :  { %767 = vperm.xlu1 %1979, %v633_v41   ;;  %762 = vperm.xlu0 %1978, %v632_v43  }
  0x86   :  { %1802 = vmatmul.mubr.f32.gmra.mrb[24].mxu0 %v88_v44 }
  0x87   :  { %1804 = vmatprep.mubr.f32.mxu0 %v89_v46 }
  0x88   :  { %777 = vperm.xlu1 %1979, %v635_v45   ;;  %772 = vperm.xlu0 %1978, %v634_v47  }
  0x8a   :  { %1805 = vmatmul.mubr.f32.gmra.mrb[26].mxu0 %v90_v48 }
  0x8b   :  { %1807 = vmatprep.mubr.f32.mxu0 %v91_v50 }
  0x8c   :  { %787 = vperm.xlu1 %1979, %v637_v49   ;;  %782 = vperm.xlu0 %1978, %v636_v51  }
  0x8e   :  { %1808 = vmatmul.mubr.f32.gmra.mrb[28].mxu0 %v92_v52 }
  0x8f   :  { %1810 = vmatprep.mubr.f32.mxu0 %v93_v54 }
  0x90   :  { %797 = vperm.xlu1 %1979, %v639_v53   ;;  %792 = vperm.xlu0 %1978, %v638_v55  }
  0x92   :  { %1811 = vmatmul.mubr.f32.gmra.mrb[30].mxu0 %v94_v56 }
  0x93   :  { %v140_v27 = vpop.permute.xlu1 %139  ;;  %v130_v28 = vpop.permute.xlu0 %129 }
  0x94   :  { %1240 = vperm.xlu1 %1979, %v1138_v57   ;;  %1235 = vperm.xlu0 %1978, %v1137_v58  }
  0x97   :  { %v145_v29 = vpop.permute.xlu1 %144  ;;  %v135_v30 = vpop.permute.xlu0 %134 }
  0x98   :  { %1160 = vperm.xlu1 %1979, %v1122_v59   ;;  %1155 = vperm.xlu0 %1978, %v1121_v60  }
  0x9b   :  { %v155_v31 = vpop.permute.xlu1 %154  ;;  %v150_v32 = vpop.permute.xlu0 %149 }
  0x9c   :  { %1250 = vperm.xlu1 %1979, %v1140_v61   ;;  %1245 = vperm.xlu0 %1978, %v1139_v62  }
  0x9f   :  { %v165_v33 = vpop.permute.xlu1 %164  ;;  %v160_v34 = vpop.permute.xlu0 %159 }
  0xa0   :  { %1170 = vperm.xlu1 %1979, %v1124_v63   ;;  %1165 = vperm.xlu0 %1978, %v1123_v0  }
  0xa3   :  { %v175_v35 = vpop.permute.xlu1 %174  ;;  %v170_v36 = vpop.permute.xlu0 %169 }
  0xa4   :  { %1260 = vperm.xlu1 %1979, %v1142_v1   ;;  %1255 = vperm.xlu0 %1978, %v1141_v2  }
  0xa7   :  { %v185_v37 = vpop.permute.xlu1 %184  ;;  %v180_v39 = vpop.permute.xlu0 %179 }
  0xa8   :  { %1180 = vperm.xlu1 %1979, %v1126_v3   ;;  %1175 = vperm.xlu0 %1978, %v1125_v4  }
  0xab   :  { %v195_v48 = vpop.permute.xlu1 %194  ;;  %v190_v51 = vpop.permute.xlu0 %189 }
  0xac   :  { %1270 = vperm.xlu1 %1979, %v1144_v5   ;;  %1265 = vperm.xlu0 %1978, %v1143_v6  }
  0xaf   :  { %v205_v60 = vpop.permute.xlu1 %204  ;;  %v200_v63 = vpop.permute.xlu0 %199 }
  0xb0   :  { %1190 = vperm.xlu1 %1979, %v1128_v7   ;;  %1185 = vperm.xlu0 %1978, %v1127_v8  }
  0xb4   :  { %1280 = vperm.xlu1 %1979, %v1146_v9   ;;  %1275 = vperm.xlu0 %1978, %v1145_v11   ;;  %v215_v9 = vpop.permute.xlu1 %214 }
  0xb8   :  { %1200 = vperm.xlu1 %1979, %v1130_v12   ;;  %1195 = vperm.xlu0 %1978, %v1129_v13   ;;  %v210_v13 = vpop.permute.xlu0 %209 }
  0xbc   :  { %1290 = vperm.xlu1 %1979, %v1148_v14   ;;  %1285 = vperm.xlu0 %1978, %v1147_v15  }
  0xc0   :  { %1210 = vperm.xlu1 %1979, %v1132_v16   ;;  %1205 = vperm.xlu0 %1978, %v1131_v17  }
  0xc4   :  { %1300 = vperm.xlu1 %1979, %v1150_v18   ;;  %1295 = vperm.xlu0 %1978, %v1149_v19  }
  0xc8   :  { %1220 = vperm.xlu1 %1979, %v1134_v20   ;;  %1215 = vperm.xlu0 %1978, %v1133_v21  }
  0xcc   :  { %1310 = vperm.xlu1 %1979, %v1152_v22   ;;  %1305 = vperm.xlu0 %1978, %v1151_v23   ;;  %v225_v22 = vpop.permute.xlu1 %224 }
  0xd0   :  { %1230 = vperm.xlu1 %1979, %v1136_v24   ;;  %1225 = vperm.xlu0 %1978, %v1135_v25   ;;  %v220_v25 = vpop.permute.xlu0 %219 }
 0x129   :  { %v1767_v38 = vpop.f32.mrb[0].mxu0 }
 0x12a   :  { %v359_v40 = vadd.f32 %v1767_v38, %v135_v30  ;;  %v353_v41 = vpop.f32.mrb[1].mxu0  ;;  %v230_v38 = vpop.permute.xlu0 %229 }
 0x12b   :  { %v354_v42 = vadd.f32 %v353_v41, %v130_v28 }
 0x12c   :  { %v513_v43 = vmax.f32 %v359_v40, 0.0 }
 0x12d   :  { %v512_v44 = vmax.f32 %v354_v42, 0.0  ;;  %v1770_v45 = vpop.f32.mrb[2].mxu0 }
 0x12e   :  { %v369_v46 = vadd.f32 %v1770_v45, %v145_v29  ;;  %v363_v47 = vpop.f32.mrb[3].mxu0 }
 0x12f   :  { %v364_v49 = vadd.f32 %v363_v47, %v140_v27  ;;  %v1846_v50 = vpack.c.bf16 %v513_v43, %v512_v44 }
 0x130   :  { %v515_v52 = vmax.f32 %v369_v46, 0.0 }
 0x131   :  { %v514_v53 = vmax.f32 %v364_v49, 0.0  ;;  %v1773_v54 = vpop.f32.mrb[4].mxu0  ;;  %1847 = vmatpush1.bf16.msra.mxu1 %v1846_v50  ;;  %v240_v50 = vpop.permute.xlu0 %239 }
 0x132   :  { %v379_v55 = vadd.f32 %v1773_v54, %v155_v31  ;;  %v373_v56 = vpop.f32.mrb[5].mxu0  ;;  %1848 = vmatprep.subr.bf16.mxu1 %v2008_v10 }
 0x133   :  { %v1849_v57 = vpack.c.bf16 %v515_v52, %v514_v53  ;;  %v374_v58 = vadd.f32 %v373_v56, %v150_v32 }
 0x134   :  { %v517_v59 = vmax.f32 %v379_v55, 0.0 }
 0x135   :  { %v516_v61 = vmax.f32 %v374_v58, 0.0  ;;  %v1776_v62 = vpop.f32.mrb[6].mxu0  ;;  %1850 = vmatpush1.bf16.msra.mxu1 %v1849_v57 }
 0x136   :  { %v389_v0 = vadd.f32 %v1776_v62, %v165_v33  ;;  %v383_v1 = vpop.f32.mrb[7].mxu0  ;;  %1851 = vmatprep.subr.bf16.mxu1 %v2008_v10 }
 0x137   :  { %v1852_v2 = vpack.c.bf16 %v517_v59, %v516_v61  ;;  %v384_v3 = vadd.f32 %v383_v1, %v160_v34 }
 0x138   :  { %v519_v4 = vmax.f32 %v389_v0, 0.0 }
 0x139   :  { %v518_v5 = vmax.f32 %v384_v3, 0.0  ;;  %v1779_v6 = vpop.f32.mrb[8].mxu0  ;;  %1853 = vmatpush1.bf16.msra.mxu1 %v1852_v2 }
 0x13a   :  { %v399_v7 = vadd.f32 %v1779_v6, %v175_v35  ;;  %v393_v8 = vpop.f32.mrb[9].mxu0  ;;  %1854 = vmatprep.subr.bf16.mxu1 %v2008_v10  ;;  %v235_v35 = vpop.permute.xlu1 %234 }
 0x13b   :  { %v1855_v11 = vpack.c.bf16 %v519_v4, %v518_v5  ;;  %v394_v12 = vadd.f32 %v393_v8, %v170_v36 }
 0x13c   :  { %v521_v14 = vmax.f32 %v399_v7, 0.0 }
 0x13d   :  { %v520_v15 = vmax.f32 %v394_v12, 0.0  ;;  %v1782_v16 = vpop.f32.mrb[10].mxu0  ;;  %1856 = vmatpush1.bf16.msra.mxu1 %v1855_v11 }
 0x13e   :  { %v409_v17 = vadd.f32 %v1782_v16, %v185_v37  ;;  %v403_v18 = vpop.f32.mrb[11].mxu0  ;;  %1857 = vmatprep.subr.bf16.mxu1 %v2008_v10  ;;  %v245_v47 = vpop.permute.xlu1 %244 }
 0x13f   :  { %v1858_v19 = vpack.c.bf16 %v521_v14, %v520_v15  ;;  %v404_v20 = vadd.f32 %v403_v18, %v180_v39 }
 0x140   :  { %v523_v21 = vmax.f32 %v409_v17, 0.0 }
 0x141   :  { %v522_v23 = vmax.f32 %v404_v20, 0.0  ;;  %v1785_v24 = vpop.f32.mrb[12].mxu0  ;;  %1859 = vmatpush1.bf16.msra.mxu1 %v1858_v19 }
 0x142   :  { %v419_v26 = vadd.f32 %v1785_v24, %v195_v48  ;;  %v413_v27 = vpop.f32.mrb[13].mxu0  ;;  %1860 = vmatprep.subr.bf16.mxu1 %v2008_v10 }
 0x143   :  { %v1861_v28 = vpack.c.bf16 %v523_v21, %v522_v23  ;;  %v414_v29 = vadd.f32 %v413_v27, %v190_v51 }
 0x144   :  { %v525_v30 = vmax.f32 %v419_v26, 0.0 }
 0x145   :  { %v524_v31 = vmax.f32 %v414_v29, 0.0  ;;  %v1788_v32 = vpop.f32.mrb[14].mxu0  ;;  %1862 = vmatpush1.bf16.msra.mxu1 %v1861_v28 }
 0x146   :  { %v429_v33 = vadd.f32 %v1788_v32, %v205_v60  ;;  %v423_v34 = vpop.f32.mrb[15].mxu0  ;;  %1863 = vmatprep.subr.bf16.mxu1 %v2008_v10  ;;  %v255_v60 = vpop.permute.xlu1 %254 }
 0x147   :  { %v1864_v36 = vpack.c.bf16 %v525_v30, %v524_v31  ;;  %v424_v37 = vadd.f32 %v423_v34, %v200_v63  ;;  %v250_v63 = vpop.permute.xlu0 %249 }
 0x148   :  { %v527_v39 = vmax.f32 %v429_v33, 0.0 }
 0x149   :  { %v526_v40 = vmax.f32 %v424_v37, 0.0  ;;  %v1791_v41 = vpop.f32.mrb[16].mxu0  ;;  %1865 = vmatpush1.bf16.msra.mxu1 %v1864_v36 }
 0x14a   :  { %v439_v42 = vadd.f32 %v1791_v41, %v215_v9  ;;  %v433_v43 = vpop.f32.mrb[17].mxu0  ;;  %1866 = vmatprep.subr.bf16.mxu1 %v2008_v10  ;;  %v265_v8 = vpop.permute.xlu1 %264 }
 0x14b   :  { %v1867_v44 = vpack.c.bf16 %v527_v39, %v526_v40  ;;  %v434_v45 = vadd.f32 %v433_v43, %v210_v13  ;;  %v260_v12 = vpop.permute.xlu0 %259 }
 0x14c   :  { %v529_v46 = vmax.f32 %v439_v42, 0.0 }
 0x14d   :  { %v528_v48 = vmax.f32 %v434_v45, 0.0  ;;  %v1794_v49 = vpop.f32.mrb[18].mxu0  ;;  %1868 = vmatpush1.bf16.msra.mxu1 %v1867_v44  ;;  %v544_v45 = vld [vmem:[%s2814_s3] sm:$0xff] }
 0x14e   :  { %v449_v51 = vadd.f32 %v1794_v49, %v225_v22  ;;  %v443_v52 = vpop.f32.mrb[19].mxu0  ;;  %1869 = vmatprep.subr.bf16.mxu1 %v2008_v10  ;;  %v275_v22 = vpop.permute.xlu1 %274  ;;  %v548_v49 = vld [vmem:[%s2814_s3 + $0x20] sm:$0xff] }
 0x14f   :  { %v1870_v53 = vpack.c.bf16 %v529_v46, %v528_v48  ;;  %v444_v54 = vadd.f32 %v443_v52, %v220_v25  ;;  %v270_v25 = vpop.permute.xlu0 %269  ;;  %v547_v46 = vld [vmem:[%s2814_s3 + $0x18] sm:$0xff]  ;;  %v549_v48 = vld [vmem:[%s2814_s3 + $0x28] sm:$0xff] }
 0x150   :  { %v531_v55 = vmax.f32 %v449_v51, 0.0  ;;  %v550_v51 = vld [vmem:[%s2814_s3 + $0x30] sm:$0xff]  ;;  %v553_v52 = vld [vmem:[%s2814_s3 + $0x48] sm:$0xff] }
 0x151   :  { %v530_v56 = vmax.f32 %v444_v54, 0.0  ;;  %v1797_v57 = vpop.f32.mrb[20].mxu0  ;;  %1871 = vmatpush1.bf16.msra.mxu1 %v1870_v53  ;;  %v552_v53 = vld [vmem:[%s2814_s3 + $0x40] sm:$0xff]  ;;  %v555_v54 = vld [vmem:[%s2814_s3 + $0x58] sm:$0xff] }
 0x152   :  { %v459_v58 = vadd.f32 %v1797_v57, %v235_v35  ;;  %v453_v59 = vpop.f32.mrb[21].mxu0  ;;  %1872 = vmatprep.subr.bf16.mxu1 %v2008_v10  ;;  %v285_v34 = vpop.permute.xlu1 %284  ;;  %v556_v57 = vld [vmem:[%s2814_s3 + $0x60] sm:$0xff] }
 0x153   :  { %v1873_v61 = vpack.c.bf16 %v531_v55, %v530_v56  ;;  %v454_v62 = vadd.f32 %v453_v59, %v230_v38  ;;  %v280_v37 = vpop.permute.xlu0 %279  ;;  %v554_v55 = vld [vmem:[%s2814_s3 + $0x50] sm:$0xff]  ;;  %v557_v56 = vld [vmem:[%s2814_s3 + $0x68] sm:$0xff] }
 0x154   :  { %v533_v0 = vmax.f32 %v459_v58, 0.0  ;;  %v559_v58 = vld [vmem:[%s2814_s3 + $0x78] sm:$0xff]  ;;  %v558_v59 = vld [vmem:[%s2814_s3 + $0x70] sm:$0xff] }
 0x155   :  { %v532_v1 = vmax.f32 %v454_v62, 0.0  ;;  %v1800_v2 = vpop.f32.mrb[22].mxu0  ;;  %1874 = vmatpush1.bf16.msra.mxu1 %v1873_v61  ;;  %v560_v61 = vld [vmem:[%s2814_s3 + $0x80] sm:$0xff]  ;;  %v563_v62 = vld [vmem:[%s2814_s3 + $0x98] sm:$0xff] }
 0x156   :  { %v469_v3 = vadd.f32 %v1800_v2, %v245_v47  ;;  %v463_v4 = vpop.f32.mrb[23].mxu0  ;;  %1875 = vmatprep.subr.bf16.mxu1 %v2008_v10  ;;  %v546_v47 = vld [vmem:[%s2814_s3 + $0x10] sm:$0xff]  ;;  %v567_v2 = vld [vmem:[%s2814_s3 + $0xb8] sm:$0xff] }
 0x157   :  { %v1876_v5 = vpack.c.bf16 %v533_v0, %v532_v1  ;;  %v464_v6 = vadd.f32 %v463_v4, %v240_v50  ;;  %v551_v50 = vld [vmem:[%s2814_s3 + $0x38] sm:$0xff]  ;;  %v565_v0 = vld [vmem:[%s2814_s3 + $0xa8] sm:$0xff]  ;;  %v564_v1 = vld [vmem:[%s2814_s3 + $0xa0] sm:$0xff] }
 0x158   :  { %v535_v7 = vmax.f32 %v469_v3, 0.0  ;;  %v566_v3 = vld [vmem:[%s2814_s3 + $0xb0] sm:$0xff]  ;;  %v569_v4 = vld [vmem:[%s2814_s3 + $0xc8] sm:$0xff] }
 0x159   :  { %v534_v9 = vmax.f32 %v464_v6, 0.0  ;;  %v1803_v11 = vpop.f32.mrb[24].mxu0  ;;  %1877 = vmatpush1.bf16.msra.mxu1 %v1876_v5  ;;  %v568_v5 = vld [vmem:[%s2814_s3 + $0xc0] sm:$0xff]  ;;  %v571_v6 = vld [vmem:[%s2814_s3 + $0xd8] sm:$0xff] }
 0x15a   :  { %v479_v13 = vadd.f32 %v1803_v11, %v255_v60  ;;  %v473_v14 = vpop.f32.mrb[25].mxu0  ;;  %1878 = vmatprep.subr.bf16.mxu1 %v2008_v10  ;;  %v561_v60 = vld [vmem:[%s2814_s3 + $0x88] sm:$0xff]  ;;  %v575_v11 = vld [vmem:[%s2814_s3 + $0xf8] sm:$0xff] }
 0x15b   :  { %v1879_v15 = vpack.c.bf16 %v535_v7, %v534_v9  ;;  %v474_v16 = vadd.f32 %v473_v14, %v250_v63  ;;  %v562_v63 = vld [vmem:[%s2814_s3 + $0x90] sm:$0xff]  ;;  %v572_v9 = vld [vmem:[%s2814_s3 + $0xe0] sm:$0xff] }
 0x15c   :  { %v537_v17 = vmax.f32 %v479_v13, 0.0  ;;  %v570_v7 = vld [vmem:[%s2814_s3 + $0xd0] sm:$0xff]  ;;  %v577_v13 = vld [vmem:[%s2814_s3 + $0x108] sm:$0xff]  ;;  %v576_v14 = vld [vmem:[%s2814_s3 + $0x100] sm:$0xff] }
 0x15d   :  { %v536_v18 = vmax.f32 %v474_v16, 0.0  ;;  %v1806_v19 = vpop.f32.mrb[26].mxu0  ;;  %1880 = vmatpush1.bf16.msra.mxu1 %v1879_v15  ;;  %v579_v15 = vld [vmem:[%s2814_s3 + $0x118] sm:$0xff]  ;;  %v578_v16 = vld [vmem:[%s2814_s3 + $0x110] sm:$0xff] }
 0x15e   :  { %v489_v20 = vadd.f32 %v1806_v19, %v265_v8  ;;  %v483_v21 = vpop.f32.mrb[27].mxu0  ;;  %1881 = vmatprep.subr.bf16.mxu1 %v2008_v10  ;;  %v573_v8 = vld [vmem:[%s2814_s3 + $0xe8] sm:$0xff]  ;;  %v583_v19 = vld [vmem:[%s2814_s3 + $0x138] sm:$0xff] }
 0x15f   :  { %v1882_v23 = vpack.c.bf16 %v537_v17, %v536_v18  ;;  %v484_v24 = vadd.f32 %v483_v21, %v260_v12  ;;  %v574_v12 = vld [vmem:[%s2814_s3 + $0xf0] sm:$0xff]  ;;  %v581_v17 = vld [vmem:[%s2814_s3 + $0x128] sm:$0xff]  ;;  %v580_v18 = vld [vmem:[%s2814_s3 + $0x120] sm:$0xff] }
 0x160   :  { %v539_v26 = vmax.f32 %v489_v20, 0.0  ;;  %v582_v20 = vld [vmem:[%s2814_s3 + $0x130] sm:$0xff]  ;;  %v585_v21 = vld [vmem:[%s2814_s3 + $0x148] sm:$0xff] }
 0x161   :  { %v538_v27 = vmax.f32 %v484_v24, 0.0  ;;  %v1809_v28 = vpop.f32.mrb[28].mxu0  ;;  %1883 = vmatpush1.bf16.msra.mxu1 %v1882_v23  ;;  %v587_v23 = vld [vmem:[%s2814_s3 + $0x158] sm:$0xff]  ;;  %v586_v24 = vld [vmem:[%s2814_s3 + $0x150] sm:$0xff] }
 0x162   :  { %v499_v29 = vadd.f32 %v1809_v28, %v275_v22  ;;  %v493_v30 = vpop.f32.mrb[29].mxu0  ;;  %1884 = vmatprep.subr.bf16.mxu1 %v2008_v10  ;;  %v584_v22 = vld [vmem:[%s2814_s3 + $0x140] sm:$0xff]  ;;  %v590_v28 = vld [vmem:[%s2814_s3 + $0x170] sm:$0xff] }
 0x163   :  { %v1885_v31 = vpack.c.bf16 %v539_v26, %v538_v27  ;;  %v494_v32 = vadd.f32 %v493_v30, %v270_v25  ;;  %v589_v25 = vld [vmem:[%s2814_s3 + $0x168] sm:$0xff]  ;;  %v588_v26 = vld [vmem:[%s2814_s3 + $0x160] sm:$0xff]  ;;  %v591_v27 = vld [vmem:[%s2814_s3 + $0x178] sm:$0xff] }
 0x164   :  { %v541_v33 = vmax.f32 %v499_v29, 0.0  ;;  %v593_v29 = vld [vmem:[%s2814_s3 + $0x188] sm:$0xff]  ;;  %v592_v30 = vld [vmem:[%s2814_s3 + $0x180] sm:$0xff] }
 0x165   :  { %v540_v35 = vmax.f32 %v494_v32, 0.0  ;;  %v1812_v36 = vpop.f32.mrb[30].mxu0  ;;  %1886 = vmatpush1.bf16.msra.mxu1 %v1885_v31  ;;  %v595_v31 = vld [vmem:[%s2814_s3 + $0x198] sm:$0xff]  ;;  %v594_v32 = vld [vmem:[%s2814_s3 + $0x190] sm:$0xff] }
 0x166   :  { %v509_v38 = vadd.f32 %v1812_v36, %v285_v34  ;;  %v503_v39 = vpop.f32.mrb[31].mxu0  ;;  %1887 = vmatprep.subr.bf16.mxu1 %v2008_v10  ;;  %v596_v34 = vld [vmem:[%s2814_s3 + $0x1a0] sm:$0xff]  ;;  %v598_v36 = vld [vmem:[%s2814_s3 + $0x1b0] sm:$0xff] }
 0x167   :  { %v1888_v40 = vpack.c.bf16 %v541_v33, %v540_v35  ;;  %v504_v41 = vadd.f32 %v503_v39, %v280_v37  ;;  %v597_v33 = vld [vmem:[%s2814_s3 + $0x1a8] sm:$0xff]  ;;  %v599_v35 = vld [vmem:[%s2814_s3 + $0x1b8] sm:$0xff] }
 0x168   :  { %v543_v42 = vmax.f32 %v509_v38, 0.0  ;;  %v601_v37 = vld [vmem:[%s2814_s3 + $0x1c8] sm:$0xff]  ;;  %v600_v38 = vld [vmem:[%s2814_s3 + $0x1c0] sm:$0xff]  ;;  %v603_v39 = vld [vmem:[%s2814_s3 + $0x1d8] sm:$0xff] }
 0x169   :  { %v542_v43 = vmax.f32 %v504_v41, 0.0  ;;  %1889 = vmatpush1.bf16.msra.mxu1 %v1888_v40  ;;  %v602_v40 = vld [vmem:[%s2814_s3 + $0x1d0] sm:$0xff]  ;;  %v605_v41 = vld [vmem:[%s2814_s3 + $0x1e8] sm:$0xff] }
 0x16a   :  { %1890 = vmatprep.subr.bf16.mxu1 %v2008_v10 }
 0x16b   :  { %v1891_v44 = vpack.c.bf16 %v543_v42, %v542_v43  ;;  %v604_v42 = vld [vmem:[%s2814_s3 + $0x1e0] sm:$0xff]  ;;  %v607_v43 = vld [vmem:[%s2814_s3 + $0x1f8] sm:$0xff] }
 0x16d   :  { %1892 = vmatpush1.bf16.msra.mxu1 %v1891_v44  ;;  %v606_v44 = vld [vmem:[%s2814_s3 + $0x1f0] sm:$0xff] }
 0x170   :  { %865 = vmatmul.mubr.f32.vlgmr.msra.gmra.mrb[0].mxu1 %v544_v45 }
 0x171   :  { %869 = vmatprep.mubr.f32.mxu1 %v547_v46 }
 0x174   :  { %870 = vmatmul.mubr.f32.gmra.mrb[2].mxu1 %v546_v47  ;;  %v643_v47 = vpop.permute.xlu0 %642 }
 0x175   :  { %874 = vmatprep.mubr.f32.mxu1 %v549_v48 }
 0x178   :  { %875 = vmatmul.mubr.f32.gmra.mrb[4].mxu1 %v548_v49  ;;  %v1058_v49 = vld [vmem:[#allocation3 + $0x8] sm:$0xff] }
 0x179   :  { %879 = vmatprep.mubr.f32.mxu1 %v551_v50  ;;  %v648_v50 = vpop.permute.xlu1 %647  ;;  %1377 = vmatprep.mubr.f32.mxu0 %v1058_v49 }
 0x17c   :  { %880 = vmatmul.mubr.f32.gmra.mrb[6].mxu1 %v550_v51 }
 0x17d   :  { %884 = vmatprep.mubr.f32.mxu1 %v553_v52 }
 0x180   :  { %885 = vmatmul.mubr.f32.gmra.mrb[8].mxu1 %v552_v53 }
 0x181   :  { %889 = vmatprep.mubr.f32.mxu1 %v555_v54 }
 0x184   :  { %890 = vmatmul.mubr.f32.gmra.mrb[10].mxu1 %v554_v55 }
 0x185   :  { %894 = vmatprep.mubr.f32.mxu1 %v557_v56 }
 0x188   :  { %895 = vmatmul.mubr.f32.gmra.mrb[12].mxu1 %v556_v57 }
 0x189   :  { %899 = vmatprep.mubr.f32.mxu1 %v559_v58 }
 0x18c   :  { %900 = vmatmul.mubr.f32.gmra.mrb[14].mxu1 %v558_v59  ;;  %v653_v59 = vpop.permute.xlu0 %652 }
 0x18d   :  { %904 = vmatprep.mubr.f32.mxu1 %v561_v60 }
 0x190   :  { %905 = vmatmul.mubr.f32.gmra.mrb[16].mxu1 %v560_v61  ;;  %v658_v61 = vpop.permute.xlu1 %657 }
 0x191   :  { %909 = vmatprep.mubr.f32.mxu1 %v563_v62 }
 0x194   :  { %910 = vmatmul.mubr.f32.gmra.mrb[18].mxu1 %v562_v63 }
 0x195   :  { %914 = vmatprep.mubr.f32.mxu1 %v565_v0 }
 0x198   :  { %915 = vmatmul.mubr.f32.gmra.mrb[20].mxu1 %v564_v1 }
 0x199   :  { %919 = vmatprep.mubr.f32.mxu1 %v567_v2 }
 0x19c   :  { %920 = vmatmul.mubr.f32.gmra.mrb[22].mxu1 %v566_v3 }
 0x19d   :  { %924 = vmatprep.mubr.f32.mxu1 %v569_v4 }
 0x1a0   :  { %925 = vmatmul.mubr.f32.gmra.mrb[24].mxu1 %v568_v5 }
 0x1a1   :  { %929 = vmatprep.mubr.f32.mxu1 %v571_v6  ;;  %v663_v6 = vpop.permute.xlu0 %662 }
 0x1a4   :  { %930 = vmatmul.mubr.f32.gmra.mrb[26].mxu1 %v570_v7 }
 0x1a5   :  { %934 = vmatprep.mubr.f32.mxu1 %v573_v8  ;;  %v668_v8 = vpop.permute.xlu1 %667 }
 0x1a8   :  { %935 = vmatmul.mubr.f32.gmra.mrb[28].mxu1 %v572_v9 }
 0x1a9   :  { %939 = vmatprep.mubr.f32.mxu1 %v575_v11 }
 0x1ac   :  { %940 = vmatmul.mubr.f32.gmra.mrb[30].mxu1 %v574_v12 }
 0x1ad   :  { %944 = vmatprep.mubr.f32.mxu1 %v577_v13 }
 0x1b0   :  { %945 = vmatmul.mubr.f32.gmra.mrb[32].mxu1 %v576_v14 }
 0x1b1   :  { %949 = vmatprep.mubr.f32.mxu1 %v579_v15 }
 0x1b4   :  { %950 = vmatmul.mubr.f32.gmra.mrb[34].mxu1 %v578_v16 }
 0x1b5   :  { %954 = vmatprep.mubr.f32.mxu1 %v581_v17 }
 0x1b8   :  { %955 = vmatmul.mubr.f32.gmra.mrb[36].mxu1 %v580_v18  ;;  %v673_v18 = vpop.permute.xlu0 %672 }
 0x1b9   :  { %959 = vmatprep.mubr.f32.mxu1 %v583_v19 }
 0x1bc   :  { %960 = vmatmul.mubr.f32.gmra.mrb[38].mxu1 %v582_v20  ;;  %v678_v20 = vpop.permute.xlu1 %677 }
 0x1bd   :  { %964 = vmatprep.mubr.f32.mxu1 %v585_v21 }
 0x1c0   :  { %965 = vmatmul.mubr.f32.gmra.mrb[40].mxu1 %v584_v22 }
 0x1c1   :  { %969 = vmatprep.mubr.f32.mxu1 %v587_v23 }
 0x1c4   :  { %970 = vmatmul.mubr.f32.gmra.mrb[42].mxu1 %v586_v24 }
 0x1c5   :  { %974 = vmatprep.mubr.f32.mxu1 %v589_v25 }
 0x1c8   :  { %975 = vmatmul.mubr.f32.gmra.mrb[44].mxu1 %v588_v26 }
 0x1c9   :  { %979 = vmatprep.mubr.f32.mxu1 %v591_v27 }
 0x1cc   :  { %980 = vmatmul.mubr.f32.gmra.mrb[46].mxu1 %v590_v28 }
 0x1cd   :  { %984 = vmatprep.mubr.f32.mxu1 %v593_v29  ;;  %v683_v29 = vpop.permute.xlu0 %682 }
 0x1d0   :  { %985 = vmatmul.mubr.f32.gmra.mrb[48].mxu1 %v592_v30 }
 0x1d1   :  { %989 = vmatprep.mubr.f32.mxu1 %v595_v31  ;;  %v688_v31 = vpop.permute.xlu1 %687 }
 0x1d4   :  { %990 = vmatmul.mubr.f32.gmra.mrb[50].mxu1 %v594_v32 }
 0x1d5   :  { %994 = vmatprep.mubr.f32.mxu1 %v597_v33 }
 0x1d8   :  { %995 = vmatmul.mubr.f32.gmra.mrb[52].mxu1 %v596_v34 }
 0x1d9   :  { %999 = vmatprep.mubr.f32.mxu1 %v599_v35 }
 0x1dc   :  { %1000 = vmatmul.mubr.f32.gmra.mrb[54].mxu1 %v598_v36 }
 0x1dd   :  { %1004 = vmatprep.mubr.f32.mxu1 %v601_v37 }
 0x1e0   :  { %1005 = vmatmul.mubr.f32.gmra.mrb[56].mxu1 %v600_v38 }
 0x1e1   :  { %1009 = vmatprep.mubr.f32.mxu1 %v603_v39 }
 0x1e4   :  { %1010 = vmatmul.mubr.f32.gmra.mrb[58].mxu1 %v602_v40  ;;  %v693_v40 = vpop.permute.xlu0 %692 }
 0x1e5   :  { %1014 = vmatprep.mubr.f32.mxu1 %v605_v41 }
 0x1e8   :  { %1015 = vmatmul.mubr.f32.gmra.mrb[60].mxu1 %v604_v42  ;;  %v698_v42 = vpop.permute.xlu1 %697 }
 0x1e9   :  { %1019 = vmatprep.mubr.f32.mxu1 %v607_v43 }
 0x1ec   :  { %1020 = vmatmul.mubr.f32.gmra.mrb[62].mxu1 %v606_v44 }
 0x243   :  { %v866_v45 = vpop.f32.mrb[0].mxu1 }
 0x244   :  { %v868_v46 = vpop.f32.mrb[1].mxu1  ;;  %v867_v48 = vadd.f32 %v866_v45, %v643_v47 }
 0x246   :  { %v1025_v54 = vmax.f32 %v867_v48, 0.0 }
 0x247   :  { %v871_v51 = vpop.f32.mrb[2].mxu1 }
 0x248   :  { %v872_v52 = vadd.f32 %v871_v51, %v648_v50  ;;  %v873_v53 = vpop.f32.mrb[3].mxu1  ;;  %v703_v51 = vpop.permute.xlu0 %702 }
 0x249   :  { %v708_v53 = vpop.permute.xlu1 %707 }
 0x24a   :  { %v1026_v55 = vmax.f32 %v872_v52, 0.0 }
 0x24b   :  { %v876_v56 = vpop.f32.mrb[4].mxu1 }
 0x24c   :  { %v1894_v57 = vpack.c.bf16 %v1026_v55, %v1025_v54  ;;  %v878_v58 = vpop.f32.mrb[5].mxu1  ;;  %v877_v60 = vadd.f32 %v876_v56, %v653_v59 }
 0x24e   :  { %1895 = vmatpush1.bf16.msra.mxu0 %v1894_v57  ;;  %v1027_v1 = vmax.f32 %v877_v60, 0.0 }
 0x24f   :  { %v881_v62 = vpop.f32.mrb[6].mxu1  ;;  %1896 = vmatprep.subr.bf16.mxu0 %v2008_v10 }
 0x250   :  { %v882_v63 = vadd.f32 %v881_v62, %v658_v61  ;;  %v883_v0 = vpop.f32.mrb[7].mxu1  ;;  %v713_v62 = vpop.permute.xlu0 %712 }
 0x251   :  { %v718_v0 = vpop.permute.xlu1 %717 }
 0x252   :  { %v1028_v2 = vmax.f32 %v882_v63, 0.0 }
 0x253   :  { %v886_v3 = vpop.f32.mrb[8].mxu1 }
 0x254   :  { %v1897_v4 = vpack.c.bf16 %v1028_v2, %v1027_v1  ;;  %v888_v5 = vpop.f32.mrb[9].mxu1  ;;  %v887_v7 = vadd.f32 %v886_v3, %v663_v6 }
 0x256   :  { %1898 = vmatpush1.bf16.msra.mxu0 %v1897_v4  ;;  %v1029_v13 = vmax.f32 %v887_v7, 0.0 }
 0x257   :  { %v891_v9 = vpop.f32.mrb[10].mxu1  ;;  %1899 = vmatprep.subr.bf16.mxu0 %v2008_v10 }
 0x258   :  { %v892_v11 = vadd.f32 %v891_v9, %v668_v8  ;;  %v893_v12 = vpop.f32.mrb[11].mxu1  ;;  %v723_v9 = vpop.permute.xlu0 %722 }
 0x259   :  { %v728_v12 = vpop.permute.xlu1 %727 }
 0x25a   :  { %v1030_v14 = vmax.f32 %v892_v11, 0.0 }
 0x25b   :  { %v896_v15 = vpop.f32.mrb[12].mxu1 }
 0x25c   :  { %v1900_v16 = vpack.c.bf16 %v1030_v14, %v1029_v13  ;;  %v898_v17 = vpop.f32.mrb[13].mxu1  ;;  %v897_v19 = vadd.f32 %v896_v15, %v673_v18 }
 0x25e   :  { %1901 = vmatpush1.bf16.msra.mxu0 %v1900_v16  ;;  %v1031_v24 = vmax.f32 %v897_v19, 0.0 }
 0x25f   :  { %v901_v21 = vpop.f32.mrb[14].mxu1  ;;  %1902 = vmatprep.subr.bf16.mxu0 %v2008_v10 }
 0x260   :  { %v902_v22 = vadd.f32 %v901_v21, %v678_v20  ;;  %v903_v23 = vpop.f32.mrb[15].mxu1  ;;  %v733_v21 = vpop.permute.xlu0 %732 }
 0x261   :  { %v738_v23 = vpop.permute.xlu1 %737 }
 0x262   :  { %v1032_v25 = vmax.f32 %v902_v22, 0.0 }
 0x263   :  { %v906_v26 = vpop.f32.mrb[16].mxu1 }
 0x264   :  { %v1903_v27 = vpack.c.bf16 %v1032_v25, %v1031_v24  ;;  %v908_v28 = vpop.f32.mrb[17].mxu1  ;;  %v907_v30 = vadd.f32 %v906_v26, %v683_v29 }
 0x266   :  { %1904 = vmatpush1.bf16.msra.mxu0 %v1903_v27  ;;  %v1033_v35 = vmax.f32 %v907_v30, 0.0 }
 0x267   :  { %v911_v32 = vpop.f32.mrb[18].mxu1  ;;  %1905 = vmatprep.subr.bf16.mxu0 %v2008_v10 }
 0x268   :  { %v912_v33 = vadd.f32 %v911_v32, %v688_v31  ;;  %v913_v34 = vpop.f32.mrb[19].mxu1  ;;  %v743_v32 = vpop.permute.xlu0 %742 }
 0x269   :  { %v748_v34 = vpop.permute.xlu1 %747 }
 0x26a   :  { %v1034_v36 = vmax.f32 %v912_v33, 0.0 }
 0x26b   :  { %v916_v37 = vpop.f32.mrb[20].mxu1 }
 0x26c   :  { %v1906_v38 = vpack.c.bf16 %v1034_v36, %v1033_v35  ;;  %v918_v39 = vpop.f32.mrb[21].mxu1  ;;  %v917_v41 = vadd.f32 %v916_v37, %v693_v40 }
 0x26e   :  { %1907 = vmatpush1.bf16.msra.mxu0 %v1906_v38  ;;  %v1035_v46 = vmax.f32 %v917_v41, 0.0 }
 0x26f   :  { %v921_v43 = vpop.f32.mrb[22].mxu1  ;;  %1908 = vmatprep.subr.bf16.mxu0 %v2008_v10 }
 0x270   :  { %v922_v44 = vadd.f32 %v921_v43, %v698_v42  ;;  %v923_v45 = vpop.f32.mrb[23].mxu1  ;;  %v753_v43 = vpop.permute.xlu0 %752 }
 0x271   :  { %v758_v45 = vpop.permute.xlu1 %757 }
 0x272   :  { %v1036_v47 = vmax.f32 %v922_v44, 0.0 }
 0x273   :  { %v926_v48 = vpop.f32.mrb[24].mxu1 }
 0x274   :  { %v1909_v49 = vpack.c.bf16 %v1036_v47, %v1035_v46  ;;  %v928_v50 = vpop.f32.mrb[25].mxu1  ;;  %v927_v52 = vadd.f32 %v926_v48, %v703_v51 }
 0x276   :  { %1910 = vmatpush1.bf16.msra.mxu0 %v1909_v49  ;;  %v1037_v57 = vmax.f32 %v927_v52, 0.0 }
 0x277   :  { %v931_v54 = vpop.f32.mrb[26].mxu1  ;;  %1911 = vmatprep.subr.bf16.mxu0 %v2008_v10 }
 0x278   :  { %v932_v55 = vadd.f32 %v931_v54, %v708_v53  ;;  %v933_v56 = vpop.f32.mrb[27].mxu1  ;;  %v763_v54 = vpop.permute.xlu0 %762 }
 0x279   :  { %v768_v56 = vpop.permute.xlu1 %767 }
 0x27a   :  { %v1038_v58 = vmax.f32 %v932_v55, 0.0 }
 0x27b   :  { %v936_v59 = vpop.f32.mrb[28].mxu1 }
 0x27c   :  { %v1912_v60 = vpack.c.bf16 %v1038_v58, %v1037_v57  ;;  %v938_v61 = vpop.f32.mrb[29].mxu1  ;;  %v937_v63 = vadd.f32 %v936_v59, %v713_v62 }
 0x27e   :  { %1913 = vmatpush1.bf16.msra.mxu0 %v1912_v60  ;;  %v1039_v4 = vmax.f32 %v937_v63, 0.0 }
 0x27f   :  { %v941_v1 = vpop.f32.mrb[30].mxu1  ;;  %1914 = vmatprep.subr.bf16.mxu0 %v2008_v10 }
 0x280   :  { %v942_v2 = vadd.f32 %v941_v1, %v718_v0  ;;  %v943_v3 = vpop.f32.mrb[31].mxu1  ;;  %v773_v1 = vpop.permute.xlu0 %772 }
 0x281   :  { %v778_v3 = vpop.permute.xlu1 %777 }
 0x282   :  { %v1040_v5 = vmax.f32 %v942_v2, 0.0 }
 0x283   :  { %v946_v6 = vpop.f32.mrb[32].mxu1 }
 0x284   :  { %v1915_v7 = vpack.c.bf16 %v1040_v5, %v1039_v4  ;;  %v948_v8 = vpop.f32.mrb[33].mxu1  ;;  %v947_v11 = vadd.f32 %v946_v6, %v723_v9 }
 0x286   :  { %1916 = vmatpush1.bf16.msra.mxu0 %v1915_v7  ;;  %v1041_v16 = vmax.f32 %v947_v11, 0.0 }
 0x287   :  { %v951_v13 = vpop.f32.mrb[34].mxu1  ;;  %1917 = vmatprep.subr.bf16.mxu0 %v2008_v10 }
 0x288   :  { %v952_v14 = vadd.f32 %v951_v13, %v728_v12  ;;  %v953_v15 = vpop.f32.mrb[35].mxu1  ;;  %v783_v13 = vpop.permute.xlu0 %782 }
 0x289   :  { %v788_v15 = vpop.permute.xlu1 %787 }
 0x28a   :  { %v1042_v17 = vmax.f32 %v952_v14, 0.0 }
 0x28b   :  { %v956_v18 = vpop.f32.mrb[36].mxu1 }
 0x28c   :  { %v1918_v19 = vpack.c.bf16 %v1042_v17, %v1041_v16  ;;  %v958_v20 = vpop.f32.mrb[37].mxu1  ;;  %v957_v22 = vadd.f32 %v956_v18, %v733_v21 }
 0x28e   :  { %1919 = vmatpush1.bf16.msra.mxu0 %v1918_v19  ;;  %v1043_v27 = vmax.f32 %v957_v22, 0.0 }
 0x28f   :  { %v961_v24 = vpop.f32.mrb[38].mxu1  ;;  %1920 = vmatprep.subr.bf16.mxu0 %v2008_v10 }
 0x290   :  { %v962_v25 = vadd.f32 %v961_v24, %v738_v23  ;;  %v963_v26 = vpop.f32.mrb[39].mxu1  ;;  %v793_v24 = vpop.permute.xlu0 %792 }
 0x291   :  { %v798_v26 = vpop.permute.xlu1 %797 }
 0x292   :  { %v1044_v28 = vmax.f32 %v962_v25, 0.0 }
 0x293   :  { %v966_v29 = vpop.f32.mrb[40].mxu1 }
 0x294   :  { %v1921_v30 = vpack.c.bf16 %v1044_v28, %v1043_v27  ;;  %v968_v31 = vpop.f32.mrb[41].mxu1  ;;  %v967_v33 = vadd.f32 %v966_v29, %v743_v32 }
 0x296   :  { %1922 = vmatpush1.bf16.msra.mxu0 %v1921_v30  ;;  %v1045_v38 = vmax.f32 %v967_v33, 0.0  ;;  %v1057_v33 = vld [vmem:[#allocation3] sm:$0xff] }
 0x297   :  { %v971_v35 = vpop.f32.mrb[42].mxu1  ;;  %1923 = vmatprep.subr.bf16.mxu0 %v2008_v10 }
 0x298   :  { %v972_v36 = vadd.f32 %v971_v35, %v748_v34  ;;  %v973_v37 = vpop.f32.mrb[43].mxu1  ;;  %v1060_v34 = vld [vmem:[#allocation3 + $0x18] sm:$0xff]  ;;  %v1059_v35 = vld [vmem:[#allocation3 + $0x10] sm:$0xff] }
 0x299   :  { %v1061_v37 = vld [vmem:[#allocation3 + $0x20] sm:$0xff] }
 0x29a   :  { %v1046_v39 = vmax.f32 %v972_v36, 0.0  ;;  %v1062_v36 = vld [vmem:[#allocation3 + $0x28] sm:$0xff] }
 0x29b   :  { %v976_v40 = vpop.f32.mrb[44].mxu1 }
 0x29c   :  { %v1924_v41 = vpack.c.bf16 %v1046_v39, %v1045_v38  ;;  %v978_v42 = vpop.f32.mrb[45].mxu1  ;;  %v977_v44 = vadd.f32 %v976_v40, %v753_v43  ;;  %v1064_v38 = vld [vmem:[#allocation3 + $0x38] sm:$0xff]  ;;  %v1063_v39 = vld [vmem:[#allocation3 + $0x30] sm:$0xff]  ;;  %v1065_v40 = vld [vmem:[#allocation3 + $0x40] sm:$0xff] }
 0x29d   :  { %v1067_v42 = vld [vmem:[#allocation3 + $0x50] sm:$0xff]  ;;  %v1070_v43 = vld [vmem:[#allocation3 + $0x68] sm:$0xff] }
 0x29e   :  { %1925 = vmatpush1.bf16.msra.mxu0 %v1924_v41  ;;  %v1047_v49 = vmax.f32 %v977_v44, 0.0  ;;  %v1068_v41 = vld [vmem:[#allocation3 + $0x58] sm:$0xff]  ;;  %v1069_v44 = vld [vmem:[#allocation3 + $0x60] sm:$0xff] }
 0x29f   :  { %v981_v46 = vpop.f32.mrb[46].mxu1  ;;  %1926 = vmatprep.subr.bf16.mxu0 %v2008_v10 }
 0x2a0   :  { %v982_v47 = vadd.f32 %v981_v46, %v758_v45  ;;  %v983_v48 = vpop.f32.mrb[47].mxu1  ;;  %v1072_v45 = vld [vmem:[#allocation3 + $0x78] sm:$0xff]  ;;  %v1071_v46 = vld [vmem:[#allocation3 + $0x70] sm:$0xff] }
 0x2a1   :  { %v1073_v48 = vld [vmem:[#allocation3 + $0x80] sm:$0xff] }
 0x2a2   :  { %v1048_v50 = vmax.f32 %v982_v47, 0.0  ;;  %v1074_v47 = vld [vmem:[#allocation3 + $0x88] sm:$0xff] }
 0x2a3   :  { %v986_v51 = vpop.f32.mrb[48].mxu1 }
 0x2a4   :  { %v1927_v52 = vpack.c.bf16 %v1048_v50, %v1047_v49  ;;  %v988_v53 = vpop.f32.mrb[49].mxu1  ;;  %v987_v55 = vadd.f32 %v986_v51, %v763_v54  ;;  %v1076_v49 = vld [vmem:[#allocation3 + $0x98] sm:$0xff]  ;;  %v1075_v50 = vld [vmem:[#allocation3 + $0x90] sm:$0xff]  ;;  %v1078_v51 = vld [vmem:[#allocation3 + $0xa8] sm:$0xff] }
 0x2a5   :  { %v1080_v53 = vld [vmem:[#allocation3 + $0xb8] sm:$0xff]  ;;  %v1079_v54 = vld [vmem:[#allocation3 + $0xb0] sm:$0xff] }
 0x2a6   :  { %1928 = vmatpush1.bf16.msra.mxu0 %v1927_v52  ;;  %v1049_v60 = vmax.f32 %v987_v55, 0.0  ;;  %v1077_v52 = vld [vmem:[#allocation3 + $0xa0] sm:$0xff]  ;;  %v1082_v55 = vld [vmem:[#allocation3 + $0xc8] sm:$0xff] }
 0x2a7   :  { %v991_v57 = vpop.f32.mrb[50].mxu1  ;;  %1929 = vmatprep.subr.bf16.mxu0 %v2008_v10 }
 0x2a8   :  { %v992_v58 = vadd.f32 %v991_v57, %v768_v56  ;;  %v993_v59 = vpop.f32.mrb[51].mxu1  ;;  %v1081_v56 = vld [vmem:[#allocation3 + $0xc0] sm:$0xff]  ;;  %v1084_v57 = vld [vmem:[#allocation3 + $0xd8] sm:$0xff] }
 0x2a9   :  { %v1086_v59 = vld [vmem:[#allocation3 + $0xe8] sm:$0xff] }
 0x2aa   :  { %v1050_v61 = vmax.f32 %v992_v58, 0.0  ;;  %v1083_v58 = vld [vmem:[#allocation3 + $0xd0] sm:$0xff] }
 0x2ab   :  { %v996_v62 = vpop.f32.mrb[52].mxu1 }
 0x2ac   :  { %v1930_v63 = vpack.c.bf16 %v1050_v61, %v1049_v60  ;;  %v998_v0 = vpop.f32.mrb[53].mxu1  ;;  %v997_v2 = vadd.f32 %v996_v62, %v773_v1  ;;  %v1085_v60 = vld [vmem:[#allocation3 + $0xe0] sm:$0xff]  ;;  %v1088_v61 = vld [vmem:[#allocation3 + $0xf8] sm:$0xff]  ;;  %v1087_v62 = vld [vmem:[#allocation3 + $0xf0] sm:$0xff] }
 0x2ad   :  { %v1089_v0 = vld [vmem:[#allocation3 + $0x100] sm:$0xff]  ;;  %v1092_v1 = vld [vmem:[#allocation3 + $0x118] sm:$0xff] }
 0x2ae   :  { %1931 = vmatpush1.bf16.msra.mxu0 %v1930_v63  ;;  %v1051_v7 = vmax.f32 %v997_v2, 0.0  ;;  %v1090_v63 = vld [vmem:[#allocation3 + $0x108] sm:$0xff]  ;;  %v1091_v2 = vld [vmem:[#allocation3 + $0x110] sm:$0xff] }
 0x2af   :  { %v1001_v4 = vpop.f32.mrb[54].mxu1  ;;  %1932 = vmatprep.subr.bf16.mxu0 %v2008_v10 }
 0x2b0   :  { %v1002_v5 = vadd.f32 %v1001_v4, %v778_v3  ;;  %v1003_v6 = vpop.f32.mrb[55].mxu1  ;;  %v1094_v3 = vld [vmem:[#allocation3 + $0x128] sm:$0xff]  ;;  %v1093_v4 = vld [vmem:[#allocation3 + $0x120] sm:$0xff] }
 0x2b1   :  { %v1095_v6 = vld [vmem:[#allocation3 + $0x130] sm:$0xff] }
 0x2b2   :  { %v1052_v8 = vmax.f32 %v1002_v5, 0.0  ;;  %v1096_v5 = vld [vmem:[#allocation3 + $0x138] sm:$0xff] }
 0x2b3   :  { %v1006_v9 = vpop.f32.mrb[56].mxu1 }
 0x2b4   :  { %v1933_v11 = vpack.c.bf16 %v1052_v8, %v1051_v7  ;;  %v1008_v12 = vpop.f32.mrb[57].mxu1  ;;  %v1007_v14 = vadd.f32 %v1006_v9, %v783_v13  ;;  %v1098_v7 = vld [vmem:[#allocation3 + $0x148] sm:$0xff]  ;;  %v1097_v8 = vld [vmem:[#allocation3 + $0x140] sm:$0xff]  ;;  %v1100_v9 = vld [vmem:[#allocation3 + $0x158] sm:$0xff] }
 0x2b5   :  { %v1102_v12 = vld [vmem:[#allocation3 + $0x168] sm:$0xff]  ;;  %v1101_v13 = vld [vmem:[#allocation3 + $0x160] sm:$0xff] }
 0x2b6   :  { %1934 = vmatpush1.bf16.msra.mxu0 %v1933_v11  ;;  %v1053_v19 = vmax.f32 %v1007_v14, 0.0  ;;  %v1099_v11 = vld [vmem:[#allocation3 + $0x150] sm:$0xff]  ;;  %v1104_v14 = vld [vmem:[#allocation3 + $0x178] sm:$0xff] }
 0x2b7   :  { %v1011_v16 = vpop.f32.mrb[58].mxu1  ;;  %1935 = vmatprep.subr.bf16.mxu0 %v2008_v10 }
 0x2b8   :  { %v1012_v17 = vadd.f32 %v1011_v16, %v788_v15  ;;  %v1013_v18 = vpop.f32.mrb[59].mxu1  ;;  %v1103_v15 = vld [vmem:[#allocation3 + $0x170] sm:$0xff]  ;;  %v1106_v16 = vld [vmem:[#allocation3 + $0x188] sm:$0xff] }
 0x2b9   :  { %v1108_v18 = vld [vmem:[#allocation3 + $0x198] sm:$0xff] }
 0x2ba   :  { %v1054_v20 = vmax.f32 %v1012_v17, 0.0  ;;  %v1105_v17 = vld [vmem:[#allocation3 + $0x180] sm:$0xff] }
 0x2bb   :  { %v1016_v21 = vpop.f32.mrb[60].mxu1 }
 0x2bc   :  { %v1936_v22 = vpack.c.bf16 %v1054_v20, %v1053_v19  ;;  %v1018_v23 = vpop.f32.mrb[61].mxu1  ;;  %v1017_v25 = vadd.f32 %v1016_v21, %v793_v24  ;;  %v1107_v19 = vld [vmem:[#allocation3 + $0x190] sm:$0xff]  ;;  %v1110_v20 = vld [vmem:[#allocation3 + $0x1a8] sm:$0xff]  ;;  %v1109_v21 = vld [vmem:[#allocation3 + $0x1a0] sm:$0xff] }
 0x2bd   :  { %v1111_v23 = vld [vmem:[#allocation3 + $0x1b0] sm:$0xff]  ;;  %v1114_v24 = vld [vmem:[#allocation3 + $0x1c8] sm:$0xff] }
 0x2be   :  { %1937 = vmatpush1.bf16.msra.mxu0 %v1936_v22  ;;  %v1055_v30 = vmax.f32 %v1017_v25, 0.0  ;;  %v1112_v22 = vld [vmem:[#allocation3 + $0x1b8] sm:$0xff]  ;;  %v1113_v25 = vld [vmem:[#allocation3 + $0x1c0] sm:$0xff] }
 0x2bf   :  { %v1021_v27 = vpop.f32.mrb[62].mxu1  ;;  %1938 = vmatprep.subr.bf16.mxu0 %v2008_v10  ;;  %v1066_v10 = vld [vmem:[#allocation3 + $0x48] sm:$0xff] }
 0x2c0   :  { %v1022_v28 = vadd.f32 %v1021_v27, %v798_v26  ;;  %v1023_v29 = vpop.f32.mrb[63].mxu1  ;;  %v1116_v26 = vld [vmem:[#allocation3 + $0x1d8] sm:$0xff]  ;;  %v1115_v27 = vld [vmem:[#allocation3 + $0x1d0] sm:$0xff] }
 0x2c1   :  { %v1117_v29 = vld [vmem:[#allocation3 + $0x1e0] sm:$0xff] }
 0x2c2   :  { %v1056_v31 = vmax.f32 %v1022_v28, 0.0  ;;  %v1118_v28 = vld [vmem:[#allocation3 + $0x1e8] sm:$0xff] }
 0x2c4   :  { %v1939_v32 = vpack.c.bf16 %v1056_v31, %v1055_v30  ;;  %v1120_v30 = vld [vmem:[#allocation3 + $0x1f8] sm:$0xff]  ;;  %v1119_v31 = vld [vmem:[#allocation3 + $0x1f0] sm:$0xff] }
 0x2c6   :  { %1940 = vmatpush1.bf16.msra.mxu0 %v1939_v32  ;;  %v2727_v32 = vpop.permute.xlu0 %1235 }
 0x2c9   :  { %1378 = vmatmul.mubr.f32.vlgmr.msra.gmra.mrb[32].mxu0 %v1057_v33  ;;  %v2729_v33 = vpop.permute.xlu1 %1240 }
 0x2ca   :  { %1382 = vmatprep.mubr.f32.mxu0 %v1060_v34  ;;  %v1156_v34 = vpop.permute.xlu0 %1155 }
 0x2cd   :  { %1383 = vmatmul.mubr.f32.gmra.mrb[34].mxu0 %v1059_v35  ;;  %v1161_v35 = vpop.permute.xlu1 %1160 }
 0x2ce   :  { %1387 = vmatprep.mubr.f32.mxu0 %v1062_v36  ;;  %v2731_v36 = vpop.permute.xlu0 %1245 }
 0x2d1   :  { %1388 = vmatmul.mubr.f32.gmra.mrb[36].mxu0 %v1061_v37  ;;  %v2733_v37 = vpop.permute.xlu1 %1250 }
 0x2d2   :  { %1392 = vmatprep.mubr.f32.mxu0 %v1064_v38  ;;  %v1166_v38 = vpop.permute.xlu0 %1165 }
 0x2d5   :  { %1393 = vmatmul.mubr.f32.gmra.mrb[38].mxu0 %v1063_v39  ;;  %v1171_v39 = vpop.permute.xlu1 %1170 }
 0x2d6   :  { %1397 = vmatprep.mubr.f32.mxu0 %v1066_v10  ;;  %v2735_v10 = vpop.permute.xlu0 %1255 }
 0x2d9   :  { %1398 = vmatmul.mubr.f32.gmra.mrb[40].mxu0 %v1065_v40  ;;  %v2737_v40 = vpop.permute.xlu1 %1260 }
 0x2da   :  { %1402 = vmatprep.mubr.f32.mxu0 %v1068_v41  ;;  %v1176_v41 = vpop.permute.xlu0 %1175 }
 0x2dd   :  { %1403 = vmatmul.mubr.f32.gmra.mrb[42].mxu0 %v1067_v42  ;;  %v1181_v42 = vpop.permute.xlu1 %1180 }
 0x2de   :  { %1407 = vmatprep.mubr.f32.mxu0 %v1070_v43 }
 0x2e1   :  { %1408 = vmatmul.mubr.f32.gmra.mrb[44].mxu0 %v1069_v44 }
 0x2e2   :  { %1412 = vmatprep.mubr.f32.mxu0 %v1072_v45 }
 0x2e5   :  { %1413 = vmatmul.mubr.f32.gmra.mrb[46].mxu0 %v1071_v46  ;;  %v2739_v46 = vpop.permute.xlu0 %1265 }
 0x2e6   :  { %1417 = vmatprep.mubr.f32.mxu0 %v1074_v47 }
 0x2e9   :  { %1418 = vmatmul.mubr.f32.gmra.mrb[48].mxu0 %v1073_v48  ;;  %v1571_v48 = vld [vmem:[%s2818_s7 + $0x8] sm:$0xff] }
 0x2ea   :  { %1422 = vmatprep.mubr.f32.mxu0 %v1076_v49  ;;  %1638 = vmatprep.mubr.f32.mxu1 %v1571_v48 }
 0x2ed   :  { %1423 = vmatmul.mubr.f32.gmra.mrb[50].mxu0 %v1075_v50 }
 0x2ee   :  { %1427 = vmatprep.mubr.f32.mxu0 %v1078_v51  ;;  %v2744_v51 = vpop.permute.xlu1 %1270 }
 0x2f1   :  { %1428 = vmatmul.mubr.f32.gmra.mrb[52].mxu0 %v1077_v52 }
 0x2f2   :  { %1432 = vmatprep.mubr.f32.mxu0 %v1080_v53 }
 0x2f5   :  { %1433 = vmatmul.mubr.f32.gmra.mrb[54].mxu0 %v1079_v54 }
 0x2f6   :  { %1437 = vmatprep.mubr.f32.mxu0 %v1082_v55 }
 0x2f9   :  { %1438 = vmatmul.mubr.f32.gmra.mrb[56].mxu0 %v1081_v56 }
 0x2fa   :  { %1442 = vmatprep.mubr.f32.mxu0 %v1084_v57  ;;  %v1186_v57 = vpop.permute.xlu0 %1185 }
 0x2fd   :  { %1443 = vmatmul.mubr.f32.gmra.mrb[58].mxu0 %v1083_v58 }
 0x2fe   :  { %1447 = vmatprep.mubr.f32.mxu0 %v1086_v59  ;;  %v1191_v59 = vpop.permute.xlu1 %1190 }
 0x301   :  { %1448 = vmatmul.mubr.f32.gmra.mrb[60].mxu0 %v1085_v60 }
 0x302   :  { %1452 = vmatprep.mubr.f32.mxu0 %v1088_v61 }
 0x305   :  { %1453 = vmatmul.mubr.f32.gmra.mrb[62].mxu0 %v1087_v62 }
 0x306   :  { %1457 = vmatprep.mubr.f32.mxu0 %v1090_v63 }
 0x309   :  { %1458 = vmatmul.mubr.f32.gmra.mrb[64].mxu0 %v1089_v0 }
 0x30a   :  { %1462 = vmatprep.mubr.f32.mxu0 %v1092_v1  ;;  %v2748_v1 = vpop.permute.xlu0 %1275 }
 0x30d   :  { %1463 = vmatmul.mubr.f32.gmra.mrb[66].mxu0 %v1091_v2 }
 0x30e   :  { %1467 = vmatprep.mubr.f32.mxu0 %v1094_v3 }
 0x311   :  { %1468 = vmatmul.mubr.f32.gmra.mrb[68].mxu0 %v1093_v4 }
 0x312   :  { %1472 = vmatprep.mubr.f32.mxu0 %v1096_v5  ;;  %v2752_v5 = vpop.permute.xlu1 %1280 }
 0x315   :  { %1473 = vmatmul.mubr.f32.gmra.mrb[70].mxu0 %v1095_v6 }
 0x316   :  { %1477 = vmatprep.mubr.f32.mxu0 %v1098_v7 }
 0x319   :  { %1478 = vmatmul.mubr.f32.gmra.mrb[72].mxu0 %v1097_v8 }
 0x31a   :  { %1482 = vmatprep.mubr.f32.mxu0 %v1100_v9 }
 0x31d   :  { %1483 = vmatmul.mubr.f32.gmra.mrb[74].mxu0 %v1099_v11  ;;  %v1196_v11 = vpop.permute.xlu0 %1195 }
 0x31e   :  { %1487 = vmatprep.mubr.f32.mxu0 %v1102_v12 }
 0x321   :  { %1488 = vmatmul.mubr.f32.gmra.mrb[76].mxu0 %v1101_v13 }
 0x322   :  { %1492 = vmatprep.mubr.f32.mxu0 %v1104_v14  ;;  %v1201_v14 = vpop.permute.xlu1 %1200 }
 0x325   :  { %1493 = vmatmul.mubr.f32.gmra.mrb[78].mxu0 %v1103_v15 }
 0x326   :  { %1497 = vmatprep.mubr.f32.mxu0 %v1106_v16 }
 0x329   :  { %1498 = vmatmul.mubr.f32.gmra.mrb[80].mxu0 %v1105_v17 }
 0x32a   :  { %1502 = vmatprep.mubr.f32.mxu0 %v1108_v18 }
 0x32d   :  { %1503 = vmatmul.mubr.f32.gmra.mrb[82].mxu0 %v1107_v19  ;;  %v2756_v19 = vpop.permute.xlu0 %1285 }
 0x32e   :  { %1507 = vmatprep.mubr.f32.mxu0 %v1110_v20 }
 0x331   :  { %1508 = vmatmul.mubr.f32.gmra.mrb[84].mxu0 %v1109_v21 }
 0x332   :  { %1512 = vmatprep.mubr.f32.mxu0 %v1112_v22 }
 0x335   :  { %1513 = vmatmul.mubr.f32.gmra.mrb[86].mxu0 %v1111_v23  ;;  %v2758_v23 = vpop.permute.xlu1 %1290 }
 0x336   :  { %1517 = vmatprep.mubr.f32.mxu0 %v1114_v24 }
 0x339   :  { %1518 = vmatmul.mubr.f32.gmra.mrb[88].mxu0 %v1113_v25 }
 0x33a   :  { %1522 = vmatprep.mubr.f32.mxu0 %v1116_v26 }
 0x33d   :  { %1523 = vmatmul.mubr.f32.gmra.mrb[90].mxu0 %v1115_v27 }
 0x33e   :  { %1527 = vmatprep.mubr.f32.mxu0 %v1118_v28 }
 0x341   :  { %1528 = vmatmul.mubr.f32.gmra.mrb[92].mxu0 %v1117_v29  ;;  %v1206_v29 = vpop.permute.xlu0 %1205 }
 0x342   :  { %1532 = vmatprep.mubr.f32.mxu0 %v1120_v30 }
 0x345   :  { %1533 = vmatmul.mubr.f32.gmra.mrb[94].mxu0 %v1119_v31  ;;  %v1211_v31 = vpop.permute.xlu1 %1210 }
 0x39c   :  { %v1379_v43 = vpop.f32.mrb[32].mxu0 }
 0x39d   :  { %v1381_v44 = vpop.f32.mrb[33].mxu0  ;;  %v1380_v45 = vadd.f32 %v1379_v43, %v1156_v34 }
 0x39f   :  { %v1538_v52 = vmax.f32 %v1380_v45, 0.0 }
 0x3a0   :  { %v1384_v47 = vpop.f32.mrb[34].mxu0 }
 0x3a1   :  { %v1385_v49 = vadd.f32 %v1384_v47, %v1161_v35  ;;  %v1386_v50 = vpop.f32.mrb[35].mxu0  ;;  %v2766_v47 = vpop.permute.xlu1 %1300 }
 0x3a3   :  { %v1539_v53 = vmax.f32 %v1385_v49, 0.0 }
 0x3a4   :  { %v1389_v54 = vpop.f32.mrb[36].mxu0 }
 0x3a5   :  { %v2746_v55 = vpack.c.bf16 %v1539_v53, %v1538_v52  ;;  %v1391_v56 = vpop.f32.mrb[37].mxu0  ;;  %v1390_v58 = vadd.f32 %v1389_v54, %v1166_v38 }
 0x3a7   :  { %v1540_v63 = vmax.f32 %v1390_v58, 0.0 }
 0x3a8   :  { %v1394_v60 = vpop.f32.mrb[38].mxu0 }
 0x3a9   :  { %v1395_v61 = vadd.f32 %v1394_v60, %v1171_v39  ;;  %v1396_v62 = vpop.f32.mrb[39].mxu0 }
 0x3ab   :  { %v1541_v0 = vmax.f32 %v1395_v61, 0.0 }
 0x3ac   :  { %v1399_v2 = vpop.f32.mrb[40].mxu0 }
 0x3ad   :  { %v2750_v3 = vpack.c.bf16 %v1541_v0, %v1540_v63  ;;  %v1401_v4 = vpop.f32.mrb[41].mxu0  ;;  %v1400_v6 = vadd.f32 %v1399_v2, %v1176_v41 }
 0x3af   :  { %v1542_v12 = vmax.f32 %v1400_v6, 0.0 }
 0x3b0   :  { %v1404_v7 = vpop.f32.mrb[42].mxu0 }
 0x3b1   :  { %v1405_v8 = vadd.f32 %v1404_v7, %v1181_v42  ;;  %v1406_v9 = vpop.f32.mrb[43].mxu0  ;;  %v2762_v42 = vpop.permute.xlu0 %1295 }
 0x3b3   :  { %v1543_v13 = vmax.f32 %v1405_v8, 0.0 }
 0x3b4   :  { %v1409_v15 = vpop.f32.mrb[44].mxu0 }
 0x3b5   :  { %v2754_v16 = vpack.c.bf16 %v1543_v13, %v1542_v12  ;;  %v1411_v17 = vpop.f32.mrb[45].mxu0  ;;  %v1410_v18 = vadd.f32 %v1409_v15, %v1186_v57  ;;  %v1216_v53 = vpop.permute.xlu0 %1215 }
 0x3b6   :  { %v1221_v57 = vpop.permute.xlu1 %1220 }
 0x3b7   :  { %v1544_v24 = vmax.f32 %v1410_v18, 0.0 }
 0x3b8   :  { %v1414_v20 = vpop.f32.mrb[46].mxu0 }
 0x3b9   :  { %v1415_v21 = vadd.f32 %v1414_v20, %v1191_v59  ;;  %v1416_v22 = vpop.f32.mrb[47].mxu0  ;;  %v2770_v62 = vpop.permute.xlu0 %1305 }
 0x3ba   :  { %v2772_v4 = vpop.permute.xlu1 %1310 }
 0x3bb   :  { %v1545_v25 = vmax.f32 %v1415_v21, 0.0 }
 0x3bc   :  { %v1419_v26 = vpop.f32.mrb[48].mxu0 }
 0x3bd   :  { %v2760_v27 = vpack.c.bf16 %v1545_v25, %v1544_v24  ;;  %v1421_v28 = vpop.f32.mrb[49].mxu0  ;;  %v1420_v30 = vadd.f32 %v1419_v26, %v1196_v11  ;;  %v1226_v12 = vpop.permute.xlu0 %1225 }
 0x3bf   :  { %v1546_v39 = vmax.f32 %v1420_v30, 0.0 }
 0x3c0   :  { %v1424_v34 = vpop.f32.mrb[50].mxu0 }
 0x3c1   :  { %v1425_v35 = vadd.f32 %v1424_v34, %v1201_v14  ;;  %v1426_v38 = vpop.f32.mrb[51].mxu0  ;;  %v1231_v14 = vpop.permute.xlu1 %1230 }
 0x3c3   :  { %v1547_v41 = vmax.f32 %v1425_v35, 0.0 }
 0x3c4   :  { %v1429_v43 = vpop.f32.mrb[52].mxu0 }
 0x3c5   :  { %v2764_v44 = vpack.c.bf16 %v1547_v41, %v1546_v39  ;;  %v1431_v45 = vpop.f32.mrb[53].mxu0  ;;  %v1430_v48 = vadd.f32 %v1429_v43, %v1206_v29 }
 0x3c7   :  { %v1548_v54 = vmax.f32 %v1430_v48, 0.0 }
 0x3c8   :  { %v1434_v49 = vpop.f32.mrb[54].mxu0 }
 0x3c9   :  { %v1435_v50 = vadd.f32 %v1434_v49, %v1211_v31  ;;  %v1436_v52 = vpop.f32.mrb[55].mxu0 }
 0x3cb   :  { %v1549_v56 = vmax.f32 %v1435_v50, 0.0 }
 0x3cc   :  { %v1439_v58 = vpop.f32.mrb[56].mxu0 }
 0x3cd   :  { %v2768_v59 = vpack.c.bf16 %v1549_v56, %v1548_v54  ;;  %v1441_v60 = vpop.f32.mrb[57].mxu0  ;;  %v1440_v61 = vadd.f32 %v1439_v58, %v1216_v53 }
 0x3cf   :  { %v1550_v6 = vmax.f32 %v1440_v61, 0.0 }
 0x3d0   :  { %v1444_v63 = vpop.f32.mrb[58].mxu0 }
 0x3d1   :  { %v1445_v0 = vadd.f32 %v1444_v63, %v1221_v57  ;;  %v1446_v2 = vpop.f32.mrb[59].mxu0 }
 0x3d3   :  { %v1551_v7 = vmax.f32 %v1445_v0, 0.0 }
 0x3d4   :  { %v1449_v8 = vpop.f32.mrb[60].mxu0 }
 0x3d5   :  { %v2774_v9 = vpack.c.bf16 %v1551_v7, %v1550_v6  ;;  %v1451_v11 = vpop.f32.mrb[61].mxu0  ;;  %v1450_v13 = vadd.f32 %v1449_v8, %v1226_v12 }
 0x3d7   :  { %v1552_v20 = vmax.f32 %v1450_v13, 0.0 }
 0x3d8   :  { %v1454_v15 = vpop.f32.mrb[62].mxu0 }
 0x3d9   :  { %v1455_v17 = vadd.f32 %v1454_v15, %v1231_v14  ;;  %v1456_v18 = vpop.f32.mrb[63].mxu0 }
 0x3db   :  { %v1553_v21 = vmax.f32 %v1455_v17, 0.0 }
 0x3dc   :  { %v1459_v22 = vpop.f32.mrb[64].mxu0 }
 0x3dd   :  { %v2776_v24 = vpack.c.bf16 %v1553_v21, %v1552_v20  ;;  %v1461_v25 = vpop.f32.mrb[65].mxu0  ;;  %v1460_v26 = vadd.f32 %v1459_v22, %v2727_v32 }
 0x3df   :  { %v1554_v31 = vmax.f32 %v1460_v26, 0.0 }
 0x3e0   :  { %v1464_v28 = vpop.f32.mrb[66].mxu0 }
 0x3e1   :  { %v1465_v29 = vadd.f32 %v1464_v28, %v2729_v33  ;;  %v1466_v30 = vpop.f32.mrb[67].mxu0 }
 0x3e3   :  { %v1555_v34 = vmax.f32 %v1465_v29, 0.0 }
 0x3e4   :  { %v1469_v35 = vpop.f32.mrb[68].mxu0 }
 0x3e5   :  { %v1941_v38 = vpack.c.bf16 %v1555_v34, %v1554_v31  ;;  %v1471_v39 = vpop.f32.mrb[69].mxu0  ;;  %v1470_v41 = vadd.f32 %v1469_v35, %v2731_v36 }
 0x3e7   :  { %1942 = vmatprep.subr.bf16.mxu1 %v1941_v38  ;;  %v1556_v49 = vmax.f32 %v1470_v41, 0.0 }
 0x3e8   :  { %v1474_v43 = vpop.f32.mrb[70].mxu0  ;;  %1944 = vmatpush3.bf16.msra.mxu1 %v2746_v55 }
 0x3e9   :  { %v1475_v45 = vadd.f32 %v1474_v43, %v2733_v37  ;;  %v1476_v48 = vpop.f32.mrb[71].mxu0 }
 0x3eb   :  { %v1557_v32 = vmax.f32 %v1475_v45, 0.0 }
 0x3ec   :  { %v1479_v50 = vpop.f32.mrb[72].mxu0 }
 0x3ed   :  { %v1945_v52 = vpack.c.bf16 %v1557_v32, %v1556_v49  ;;  %v1481_v33 = vpop.f32.mrb[73].mxu0  ;;  %v1480_v53 = vadd.f32 %v1479_v50, %v2735_v10 }
 0x3ef   :  { %1946 = vmatprep.subr.bf16.mxu1 %v1945_v52  ;;  %v1558_v57 = vmax.f32 %v1480_v53, 0.0 }
 0x3f0   :  { %v1484_v54 = vpop.f32.mrb[74].mxu0  ;;  %1948 = vmatpush3.bf16.msra.mxu1 %v2750_v3 }
 0x3f1   :  { %v1485_v36 = vadd.f32 %v1484_v54, %v2737_v40  ;;  %v1486_v56 = vpop.f32.mrb[75].mxu0 }
 0x3f3   :  { %v1559_v58 = vmax.f32 %v1485_v36, 0.0 }
 0x3f4   :  { %v1489_v55 = vpop.f32.mrb[76].mxu0 }
 0x3f5   :  { %v1949_v60 = vpack.c.bf16 %v1559_v58, %v1558_v57  ;;  %v1491_v37 = vpop.f32.mrb[77].mxu0  ;;  %v1490_v61 = vadd.f32 %v1489_v55, %v2739_v46 }
 0x3f7   :  { %1950 = vmatprep.subr.bf16.mxu1 %v1949_v60  ;;  %v1560_v2 = vmax.f32 %v1490_v61, 0.0 }
 0x3f8   :  { %v1494_v63 = vpop.f32.mrb[78].mxu0  ;;  %1952 = vmatpush3.bf16.msra.mxu1 %v2754_v16 }
 0x3f9   :  { %v1495_v10 = vadd.f32 %v1494_v63, %v2744_v51  ;;  %v1496_v0 = vpop.f32.mrb[79].mxu0 }
 0x3fb   :  { %v1561_v6 = vmax.f32 %v1495_v10, 0.0 }
 0x3fc   :  { %v1499_v3 = vpop.f32.mrb[80].mxu0 }
 0x3fd   :  { %v1953_v7 = vpack.c.bf16 %v1561_v6, %v1560_v2  ;;  %v1501_v40 = vpop.f32.mrb[81].mxu0  ;;  %v1500_v8 = vadd.f32 %v1499_v3, %v2748_v1 }
 0x3ff   :  { %1954 = vmatprep.subr.bf16.mxu1 %v1953_v7  ;;  %v1562_v13 = vmax.f32 %v1500_v8, 0.0 }
 0x400   :  { %v1504_v11 = vpop.f32.mrb[82].mxu0  ;;  %1956 = vmatpush3.bf16.msra.mxu1 %v2760_v27 }
 0x401   :  { %v1505_v46 = vadd.f32 %v1504_v11, %v2752_v5  ;;  %v1506_v12 = vpop.f32.mrb[83].mxu0 }
 0x403   :  { %v1563_v14 = vmax.f32 %v1505_v46, 0.0 }
 0x404   :  { %v1509_v16 = vpop.f32.mrb[84].mxu0 }
 0x405   :  { %v1957_v15 = vpack.c.bf16 %v1563_v14, %v1562_v13  ;;  %v1511_v51 = vpop.f32.mrb[85].mxu0  ;;  %v1510_v17 = vadd.f32 %v1509_v16, %v2756_v19 }
 0x407   :  { %1958 = vmatprep.subr.bf16.mxu1 %v1957_v15  ;;  %v1564_v21 = vmax.f32 %v1510_v17, 0.0 }
 0x408   :  { %v1514_v18 = vpop.f32.mrb[86].mxu0  ;;  %1960 = vmatpush3.bf16.msra.mxu1 %v2764_v44 }
 0x409   :  { %v1515_v1 = vadd.f32 %v1514_v18, %v2758_v23  ;;  %v1516_v20 = vpop.f32.mrb[87].mxu0 }
 0x40b   :  { %v1565_v22 = vmax.f32 %v1515_v1, 0.0 }
 0x40c   :  { %v1519_v27 = vpop.f32.mrb[88].mxu0 }
 0x40d   :  { %v1961_v25 = vpack.c.bf16 %v1565_v22, %v1564_v21  ;;  %v1521_v5 = vpop.f32.mrb[89].mxu0  ;;  %v1520_v26 = vadd.f32 %v1519_v27, %v2762_v42 }
 0x40f   :  { %1962 = vmatprep.subr.bf16.mxu1 %v1961_v25  ;;  %v1566_v30 = vmax.f32 %v1520_v26, 0.0 }
 0x410   :  { %v1524_v28 = vpop.f32.mrb[90].mxu0  ;;  %1964 = vmatpush3.bf16.msra.mxu1 %v2768_v59 }
 0x411   :  { %v1525_v19 = vadd.f32 %v1524_v28, %v2766_v47  ;;  %v1526_v29 = vpop.f32.mrb[91].mxu0  ;;  %v1570_v47 = vld [vmem:[%s2818_s7] sm:$0xff] }
 0x413   :  { %v1567_v31 = vmax.f32 %v1525_v19, 0.0 }
 0x414   :  { %v1529_v44 = vpop.f32.mrb[92].mxu0 }
 0x415   :  { %v1965_v34 = vpack.c.bf16 %v1567_v31, %v1566_v30  ;;  %v1531_v23 = vpop.f32.mrb[93].mxu0  ;;  %v1530_v35 = vadd.f32 %v1529_v44, %v2770_v62  ;;  %v1573_v62 = vstv %s2819_s8 }
 0x417   :  { %1966 = vmatprep.subr.bf16.mxu1 %v1965_v34  ;;  %v1568_v41 = vmax.f32 %v1530_v35, 0.0 }
 0x418   :  { %v1534_v38 = vpop.f32.mrb[94].mxu0  ;;  %1968 = vmatpush3.bf16.msra.mxu1 %v2774_v9 }
 0x419   :  { %v1535_v42 = vadd.f32 %v1534_v38, %v2772_v4  ;;  %v1536_v39 = vpop.f32.mrb[95].mxu0 }
 0x41b   :  { %v1569_v43 = vmax.f32 %v1535_v42, 0.0 }
 0x41d   :  { %v1969_v59 = vpack.c.bf16 %v1569_v43, %v1568_v41 }
 0x41f   :  { %1970 = vmatprep.subr.bf16.mxu1 %v1969_v59 }
 0x420   :  { %1972 = vmatpush3.bf16.msra.mxu1 %v2776_v24 }
 0x423   :  { %1639 = vmatmul.mubr.f32.vlgmr.msra.gmra.mrb[64].mxu1 %v1570_v47 }
 0x4f6   :  { %v1730_v45 = vpop.f32.mrb[64].mxu1 }
 0x4f7   :  { %v1731_v9 = vpop.f32.mrb[65].mxu1 }
 0x4f8   :  { %v1732_v48 = vadd.f32 %v1731_v9, %v1730_v45 }
 0x4fa   :  { %v1641_v4 = vadd.f32 %v1732_v48, %v1573_v62 }
 0x4fc   :  { %1644 = vst [vmem:[%s2820_s9] sm:$0xff] %v1641_v4 }
 0x4fd   :  { %1649 = vsyncpa [#allocation4], 1 }

</bundles_post_ra>
